<compile_context>
chip_gen: v6e
topology: v6e:2x2x1
jax: 0.10.0
libtpu: 0.0.40
codegen_flags: <defaults>
</compile_context>

<pallas_src>
import functools

import jax
import jax.numpy as jnp
from jax.experimental import pallas as pl
from jax.experimental.pallas import tpu as pltpu


def _round_up(x, m):
    return (x + m - 1) // m * m


# ------------- Stage 1: encoder + input->gate precompute (parallel) -------- #

def _encoder_gates_kernel(obs_ref, w1_ref, b1_ref, w2_ref, b2_ref,
                          w3_ref, b3_ref, wih_ref, bg_ref, xg_ref):
    tc, b, d = obs_ref.shape
    x = obs_ref[...].reshape(tc * b, d)                       # rows = Tc*B_pad
    h1 = jnp.tanh(jnp.dot(x, w1_ref[...],
                          preferred_element_type=jnp.float32) + b1_ref[...])
    h2 = jnp.tanh(jnp.dot(h1, w2_ref[...],
                          preferred_element_type=jnp.float32) + b2_ref[...])
    emb = jnp.dot(h2, w3_ref[...],
                  preferred_element_type=jnp.float32) + b3_ref[...]
    # input-to-gate term for ALL timesteps, biases (bih+bhh) folded in
    xg = jnp.dot(emb, wih_ref[...],
                 preferred_element_type=jnp.float32) + bg_ref[...]
    xg_ref[...] = xg.reshape(tc, b, xg.shape[-1])


# ------------- Stage 2: serial LSTM recurrence (batch-parallel grid) ------- #

def _lstm_kernel(xg_ref, whh_ref, h_out_ref, h_scr, c_scr,
                 *, hidden_size, t_chunk, unroll):
    # reset carries at the start of each batch tile (time-chunk axis == 0)
    @pl.when(pl.program_id(1) == 0)
    def _():
        h_scr[...] = jnp.zeros_like(h_scr)
        c_scr[...] = jnp.zeros_like(c_scr)

    H = hidden_size
    whh = whh_ref[...]          # load recurrent weights once per chunk

    def step(t, carry):
        h, c = carry
        # only the recurrent matmul stays on the serial path (K = H)
        gates = xg_ref[t] + jnp.dot(h, whh,
                                    preferred_element_type=jnp.float32)
        # PyTorch gate order [i, f, g, o].
        # TODO(synk): gate slices at 64-lane offsets are not vreg-aligned for
        # H=64; lane-aligned layouts (H padded to 128) trade extra MXU/EUP
        # work for the relayout -- kept simple here.
        i_g = jax.nn.sigmoid(gates[:, 0 * H:1 * H])
        f_g = jax.nn.sigmoid(gates[:, 1 * H:2 * H])
        g_g = jnp.tanh(gates[:, 2 * H:3 * H])
        o_g = jax.nn.sigmoid(gates[:, 3 * H:4 * H])
        c = f_g * c + i_g * g_g
        h = o_g * jnp.tanh(c)
        h_out_ref[t] = h
        return h, c

    h_f, c_f = jax.lax.fori_loop(0, t_chunk, step,
                                 (h_scr[...], c_scr[...]), unroll=unroll)
    h_scr[...] = h_f
    c_scr[...] = c_f


# ------------- Stage 3: output head (parallel, time-batched) --------------- #

def _head_kernel(h_ref, avail_ref, wout_ref, bout_ref, out_ref):
    tc, b, hdim = h_ref.shape
    a = out_ref.shape[-1]
    h = h_ref[...].reshape(tc * b, hdim)
    logits = jnp.dot(h, wout_ref[...],
                     preferred_element_type=jnp.float32) + bout_ref[...]
    logits = logits - jnp.max(logits, axis=-1, keepdims=True)
    e = jnp.exp(logits)
    probs = e * pl.reciprocal(jnp.sum(e, axis=-1, keepdims=True))
    mp = probs * avail_ref[...].reshape(tc * b, a)
    mp = mp * pl.reciprocal(jnp.sum(mp, axis=-1, keepdims=True))
    out_ref[...] = mp.reshape(tc, b, a)


# ------------------------------ JAX wrapper -------------------------------- #

def dec_categorical_lstm_policy_forward(params, obs_n, avail_actions_n,
                                        *, n_agents):
    """Replicates DecCategoricalLSTMPolicy.forward (state_include_actions=False).

    obs_n:           (n_paths, T, n_agents * obs_dim)    float32
    avail_actions_n: (n_paths, T, n_agents * action_dim) float32 (0/1)
    returns masked probs: (n_paths, T, n_agents, action_dim)
    """
    f32 = jnp.float32
    n_paths, T = obs_n.shape[0], obs_n.shape[1]
    obs_dim = obs_n.shape[-1] // n_agents
    action_dim = avail_actions_n.shape[-1] // n_agents
    B = n_paths * n_agents
    H = params['whh'].shape[0]
    G = 4 * H

    # glue: (n_paths, T, n_agents, feat) -> time-major (T, B, feat)
    obs_tm = obs_n.reshape(n_paths, T, n_agents, obs_dim)
    obs_tm = jnp.transpose(obs_tm, (1, 0, 2, 3)).reshape(T, B, obs_dim).astype(f32)
    avail_tm = avail_actions_n.reshape(n_paths, T, n_agents, action_dim)
    avail_tm = jnp.transpose(avail_tm, (1, 0, 2, 3)).reshape(T, B, action_dim).astype(f32)

    # --- padding / tiling choices (static, derived from shapes) ---
    B_pad = _round_up(B, 8)                       # f32 sublane multiple
    B_tile = B_pad if B_pad <= 256 else 128       # batch tile for LSTM grid
    B_pad = _round_up(B_pad, B_tile)
    bytes_per_t = B_pad * G * 4
    Tc = max(1, min(T, (2 << 20) // bytes_per_t)) # ~2 MiB xgates block
    T_pad = _round_up(T, Tc)

    obs_p = jnp.zeros((T_pad, B_pad, obs_dim), f32).at[:T, :B].set(obs_tm)
    # padded rows get all-ones avail so the renorm never divides by zero there
    avail_p = jnp.ones((T_pad, B_pad, action_dim), f32).at[:T, :B].set(avail_tm)

    # fold the two LSTM biases into the precomputed input-gate term
    bias_gate = (params['bih'] + params['bhh']).astype(f32)

    n_tc = T_pad // Tc
    n_bt = B_pad // B_tile

    # ---------------- Stage 1: encoder + input gates ---------------- #
    enc_weights = (params['w1'], params['b1'], params['w2'], params['b2'],
                   params['w3'], params['b3'], params['wih'], bias_gate)

    xg = pl.pallas_call(
        _encoder_gates_kernel,
        grid_spec=pltpu.PrefetchScalarGridSpec(
            num_scalar_prefetch=0,
            grid=(n_tc,),
            in_specs=[pl.BlockSpec((Tc, B_pad, obs_dim), lambda t: (t, 0, 0))]
                     + [pl.BlockSpec(w.shape, lambda t: (0, 0))
                        for w in enc_weights],
            out_specs=pl.BlockSpec((Tc, B_pad, G), lambda t: (t, 0, 0)),
        ),
        out_shape=jax.ShapeDtypeStruct((T_pad, B_pad, G), f32),
        compiler_params=pltpu.CompilerParams(
            dimension_semantics=("parallel",)),
    )(obs_p, *enc_weights)

    # ---------------- Stage 2: LSTM recurrence ---------------- #
    unroll = Tc <= 16
    h_all = pl.pallas_call(
        functools.partial(_lstm_kernel, hidden_size=H, t_chunk=Tc,
                          unroll=unroll),
        grid_spec=pltpu.PrefetchScalarGridSpec(
            num_scalar_prefetch=0,
            grid=(n_bt, n_tc),
            in_specs=[
                pl.BlockSpec((Tc, B_tile, G), lambda b, t: (t, b, 0)),
                pl.BlockSpec(params['whh'].shape, lambda b, t: (0, 0)),
            ],
            out_specs=pl.BlockSpec((Tc, B_tile, H), lambda b, t: (t, b, 0)),
            scratch_shapes=[pltpu.VMEM((B_tile, H), f32),   # h carry
                            pltpu.VMEM((B_tile, H), f32)],  # c carry
        ),
        out_shape=jax.ShapeDtypeStruct((T_pad, B_pad, H), f32),
        compiler_params=pltpu.CompilerParams(
            dimension_semantics=("parallel", "arbitrary")),
    )(xg, params['whh'])

    # ---------------- Stage 3: output head ---------------- #
    out_p = pl.pallas_call(
        _head_kernel,
        grid_spec=pltpu.PrefetchScalarGridSpec(
            num_scalar_prefetch=0,
            grid=(n_tc,),
            in_specs=[
                pl.BlockSpec((Tc, B_pad, H), lambda t: (t, 0, 0)),
                pl.BlockSpec((Tc, B_pad, action_dim), lambda t: (t, 0, 0)),
                pl.BlockSpec(params['wout'].shape, lambda t: (0, 0)),
                pl.BlockSpec(params['bout'].shape, lambda t: (0, 0)),
            ],
            out_specs=pl.BlockSpec((Tc, B_pad, action_dim),
                                   lambda t: (t, 0, 0)),
        ),
        out_shape=jax.ShapeDtypeStruct((T_pad, B_pad, action_dim), f32),
        compiler_params=pltpu.CompilerParams(
            dimension_semantics=("parallel",)),
    )(h_all, avail_p, params['wout'], params['bout'])

    # glue back: (T, B, A) -> (n_paths, T, n_agents, A)
    out = out_p[:T, :B].reshape(T, n_paths, n_agents, action_dim)
    return jnp.transpose(out, (1, 0, 2, 3))


# --------------------------- pure-JAX reference ---------------------------- #

def reference_forward(params, obs_n, avail_actions_n, *, n_agents):
    n_paths, T = obs_n.shape[0], obs_n.shape[1]
    obs_dim = obs_n.shape[-1] // n_agents
    action_dim = avail_actions_n.shape[-1] // n_agents
    B = n_paths * n_agents
    H = params['whh'].shape[0]

    obs = obs_n.reshape(n_paths, T, n_agents, obs_dim)
    h1 = jnp.tanh(obs @ params['w1'] + params['b1'])
    h2 = jnp.tanh(h1 @ params['w2'] + params['b2'])
    emb = h2 @ params['w3'] + params['b3']
    emb = jnp.transpose(emb, (1, 0, 2, 3)).reshape(T, B, -1)

    def step(carry, x_t):
        h, c = carry
        gates = x_t @ params['wih'] + h @ params['whh'] + params['bih'] + params['bhh']
        i = jax.nn.sigmoid(gates[:, 0 * H:1 * H])
        f = jax.nn.sigmoid(gates[:, 1 * H:2 * H])
        g = jnp.tanh(gates[:, 2 * H:3 * H])
        o = jax.nn.sigmoid(gates[:, 3 * H:4 * H])
        c = f * c + i * g
        h = o * jnp.tanh(c)
        return (h, c), h

    (_, _), hs = jax.lax.scan(step, (jnp.zeros((B, H)), jnp.zeros((B, H))), emb)
    logits = hs @ params['wout'] + params['bout']
    probs = jax.nn.softmax(logits, axis=-1)

    avail = avail_actions_n.reshape(n_paths, T, n_agents, action_dim)
    probs = probs.reshape(T, n_paths, n_agents, action_dim)
    probs = jnp.transpose(probs, (1, 0, 2, 3)) * avail
    return probs / jnp.sum(probs, axis=-1, keepdims=True)


# ----------------------------- param creation ------------------------------ #

def xavier_uniform(key, fan_in, fan_out):
    bound = (6.0 / (fan_in + fan_out)) ** 0.5
    return jax.random.uniform(key, (fan_in, fan_out), jnp.float32, -bound, bound)


def make_params(key, obs_dim, encoder_hidden, embedding_dim,
                lstm_hidden, action_dim):
    ks = jax.random.split(key, 8)
    h1, h2 = encoder_hidden
    lim = 1.0 / (lstm_hidden ** 0.5)   # PyTorch nn.LSTM default init
    params = {
        # MLP encoder (weights stored as (in, out); biases zero-init)
        'w1': xavier_uniform(ks[0], obs_dim, h1),
        'b1': jnp.zeros((1, h1), jnp.float32),
        'w2': xavier_uniform(ks[1], h1, h2),
        'b2': jnp.zeros((1, h2), jnp.float32),
        'w3': xavier_uniform(ks[2], h2, embedding_dim),
        'b3': jnp.zeros((1, embedding_dim), jnp.float32),
        # LSTM (stored already transposed: x @ wih, h @ whh; gate order i,f,g,o)
        'wih': jax.random.uniform(ks[3], (embedding_dim, 4 * lstm_hidden),
                                  jnp.float32, -lim, lim),
        'whh': jax.random.uniform(ks[4], (lstm_hidden, 4 * lstm_hidden),
                                  jnp.float32, -lim, lim),
        'bih': jax.random.uniform(ks[5], (1, 4 * lstm_hidden),
                                  jnp.float32, -lim, lim),
        'bhh': jax.random.uniform(ks[6], (1, 4 * lstm_hidden),
                                  jnp.float32, -lim, lim),
        # output head
        'wout': xavier_uniform(ks[7], lstm_hidden, action_dim),
        'bout': jnp.zeros((1, action_dim), jnp.float32),
    }
    return params


# ---------------------------------- main ----------------------------------- #

if __name__ == "__main__":
    n_paths, T, n_agents = 2, 8, 3
    obs_dim, action_dim = 10, 5
    encoder_hidden, embedding_dim, lstm_hidden = (64, 64), 64, 64

    key = jax.random.PRNGKey(0)
    kp, ko, ka = jax.random.split(key, 3)

    params = make_params(kp, obs_dim, encoder_hidden, embedding_dim,
                         lstm_hidden, action_dim)

    obs_n = jax.random.normal(ko, (n_paths, T, n_agents * obs_dim), jnp.float32)
    avail = jax.random.bernoulli(
        ka, 0.7, (n_paths, T, n_agents, action_dim)).astype(jnp.float32)
    avail = avail.at[..., 0].set(1.0)     # ensure at least one available action
    avail_n = avail.reshape(n_paths, T, n_agents * action_dim)

    fwd = jax.jit(functools.partial(dec_categorical_lstm_policy_forward,
                                    n_agents=n_agents))
    out = fwd(params, obs_n, avail_n)
    out = jax.block_until_ready(out)

    ref = reference_forward(params, obs_n, avail_n, n_agents=n_agents)
    assert out.shape == (n_paths, T, n_agents, action_dim)
    assert jnp.allclose(out, ref, atol=1e-4), "mismatch vs JAX reference"
    # probabilities sum to 1 over the action dim
    assert jnp.allclose(jnp.sum(out, axis=-1), 1.0, atol=1e-4)

    print("KERNEL_OK")
</pallas_src>

<mosaic_0001>
module attributes {stable_mosaic.version = 11 : i64} {
  func.func @_lstm_kernel(%arg0: i32, %arg1: i32, %arg2: memref<8x8x256xf32, #tpu.memory_space<vmem>>, %arg3: memref<64x256xf32, #tpu.memory_space<vmem>>, %arg4: memref<8x8x64xf32, #tpu.memory_space<vmem>>, %arg5: memref<8x64xf32, #tpu.memory_space<vmem>>, %arg6: memref<8x64xf32, #tpu.memory_space<vmem>>) attributes {dimension_semantics = [#tpu.dimension_semantics<parallel>, #tpu.dimension_semantics<arbitrary>], iteration_bounds = array<i64: 1, 1>, scalar_prefetch = 0 : i64, scratch_operands = 2 : i64, tpu.core_type = #tpu.core_type<tc>, window_params = [{transform_indices = @transform_0, window_bounds = array<i64: 8, 8, 256>}, {pipeline_mode = #tpu.pipeline_mode<synchronous>, transform_indices = @transform_1, window_bounds = array<i64: 64, 256>}, {transform_indices = @transform_2, window_bounds = array<i64: 8, 8, 64>}]} {
    %c0_i32 = arith.constant 0 : i32
    %0 = arith.cmpi eq, %arg1, %c0_i32 : i32
    %1 = arith.extui %0 : i1 to i32
    %c0_i32_0 = arith.constant 0 : i32
    %2 = arith.cmpi ne, %1, %c0_i32_0 : i32
    scf.if %2 {
      %cst_74 = arith.constant 0.000000e+00 : f32
      %280 = vector.broadcast %cst_74 : f32 to vector<8x64xf32>
      %c0_75 = arith.constant 0 : index
      %c0_76 = arith.constant 0 : index
      %281 = vector.load %arg5[%c0_75, %c0_76] : memref<8x64xf32, #tpu.memory_space<vmem>>, vector<8x64xf32>
      tpu.vector_store %arg5[%c0_75, %c0_76], %280 {strides = array<i32>} : memref<8x64xf32, #tpu.memory_space<vmem>>, vector<8x64xf32>,
      %cst_77 = arith.constant 0.000000e+00 : f32
      %282 = vector.broadcast %cst_77 : f32 to vector<8x64xf32>
      %c0_78 = arith.constant 0 : index
      %c0_79 = arith.constant 0 : index
      %283 = vector.load %arg6[%c0_78, %c0_79] : memref<8x64xf32, #tpu.memory_space<vmem>>, vector<8x64xf32>
      tpu.vector_store %arg6[%c0_78, %c0_79], %282 {strides = array<i32>} : memref<8x64xf32, #tpu.memory_space<vmem>>, vector<8x64xf32>,
    } else {
    }
    %c0 = arith.constant 0 : index
    %c0_1 = arith.constant 0 : index
    %3 = vector.load %arg3[%c0, %c0_1] : memref<64x256xf32, #tpu.memory_space<vmem>>, vector<64x256xf32>
    %c0_2 = arith.constant 0 : index
    %c0_3 = arith.constant 0 : index
    %4 = vector.load %arg5[%c0_2, %c0_3] : memref<8x64xf32, #tpu.memory_space<vmem>>, vector<8x64xf32>
    %c0_4 = arith.constant 0 : index
    %c0_5 = arith.constant 0 : index
    %5 = vector.load %arg6[%c0_4, %c0_5] : memref<8x64xf32, #tpu.memory_space<vmem>>, vector<8x64xf32>
    %c0_i32_6 = arith.constant 0 : i32
    %6 = arith.index_cast %c0_i32_6 : i32 to index
    %c0_7 = arith.constant 0 : index
    %c0_8 = arith.constant 0 : index
    %7 = vector.load %arg2[%6, %c0_7, %c0_8] : memref<8x8x256xf32, #tpu.memory_space<vmem>>, vector<1x8x256xf32>
    %8 = vector.shape_cast %7 : vector<1x8x256xf32> to vector<8x256xf32>
    %cst = arith.constant dense<0.000000e+00> : vector<8x256xf32>
    %9 = tpu.matmul %4, %3, %cst {dimension_numbers = #tpu.dot_dimension_numbers<[1], [0], [0], [1], [0, 0, 1, 1], [], []>} : vector<8x64xf32>, vector<64x256xf32>, vector<8x256xf32> -> vector<8x256xf32>
    %10 = arith.addf %8, %9 : vector<8x256xf32>
    %11 = vector.extract_strided_slice %10 {offsets = [0, 0], sizes = [8, 64], strides = [1, 1]} : vector<8x256xf32> to vector<8x64xf32>
    %12 = arith.negf %11 : vector<8x64xf32>
    %13 = math.exp %12 : vector<8x64xf32>
    %cst_9 = arith.constant 1.000000e+00 : f32
    %14 = vector.broadcast %cst_9 : f32 to vector<8x64xf32>
    %15 = arith.addf %14, %13 : vector<8x64xf32>
    %16 = arith.divf %14, %15 : vector<8x64xf32>
    %17 = vector.extract_strided_slice %10 {offsets = [0, 64], sizes = [8, 64], strides = [1, 1]} : vector<8x256xf32> to vector<8x64xf32>
    %18 = arith.negf %17 : vector<8x64xf32>
    %19 = math.exp %18 : vector<8x64xf32>
    %cst_10 = arith.constant 1.000000e+00 : f32
    %20 = vector.broadcast %cst_10 : f32 to vector<8x64xf32>
    %21 = arith.addf %20, %19 : vector<8x64xf32>
    %22 = arith.divf %20, %21 : vector<8x64xf32>
    %23 = vector.extract_strided_slice %10 {offsets = [0, 128], sizes = [8, 64], strides = [1, 1]} : vector<8x256xf32> to vector<8x64xf32>
    %24 = math.tanh %23 : vector<8x64xf32>
    %25 = vector.extract_strided_slice %10 {offsets = [0, 192], sizes = [8, 64], strides = [1, 1]} : vector<8x256xf32> to vector<8x64xf32>
    %26 = arith.negf %25 : vector<8x64xf32>
    %27 = math.exp %26 : vector<8x64xf32>
    %cst_11 = arith.constant 1.000000e+00 : f32
    %28 = vector.broadcast %cst_11 : f32 to vector<8x64xf32>
    %29 = arith.addf %28, %27 : vector<8x64xf32>
    %30 = arith.divf %28, %29 : vector<8x64xf32>
    %31 = arith.mulf %22, %5 : vector<8x64xf32>
    %32 = arith.mulf %16, %24 : vector<8x64xf32>
    %33 = arith.addf %31, %32 : vector<8x64xf32>
    %34 = math.tanh %33 : vector<8x64xf32>
    %35 = arith.mulf %30, %34 : vector<8x64xf32>
    %36 = arith.index_cast %c0_i32_6 : i32 to index
    %c0_12 = arith.constant 0 : index
    %c0_13 = arith.constant 0 : index
    %37 = vector.load %arg4[%36, %c0_12, %c0_13] : memref<8x8x64xf32, #tpu.memory_space<vmem>>, vector<1x8x64xf32>
    %38 = vector.shape_cast %37 : vector<1x8x64xf32> to vector<8x64xf32>
    %39 = vector.shape_cast %35 : vector<8x64xf32> to vector<1x8x64xf32>
    tpu.vector_store %arg4[%36, %c0_12, %c0_13], %39 {strides = array<i32>} : memref<8x8x64xf32, #tpu.memory_space<vmem>>, vector<1x8x64xf32>,
    %c1_i32 = arith.constant 1 : i32
    %40 = arith.index_cast %c1_i32 : i32 to index
    %c0_14 = arith.constant 0 : index
    %c0_15 = arith.constant 0 : index
    %41 = vector.load %arg2[%40, %c0_14, %c0_15] : memref<8x8x256xf32, #tpu.memory_space<vmem>>, vector<1x8x256xf32>
    %42 = vector.shape_cast %41 : vector<1x8x256xf32> to vector<8x256xf32>
    %cst_16 = arith.constant dense<0.000000e+00> : vector<8x256xf32>
    %43 = tpu.matmul %35, %3, %cst_16 {dimension_numbers = #tpu.dot_dimension_numbers<[1], [0], [0], [1], [0, 0, 1, 1], [], []>} : vector<8x64xf32>, vector<64x256xf32>, vector<8x256xf32> -> vector<8x256xf32>
    %44 = arith.addf %42, %43 : vector<8x256xf32>
    %45 = vector.extract_strided_slice %44 {offsets = [0, 0], sizes = [8, 64], strides = [1, 1]} : vector<8x256xf32> to vector<8x64xf32>
    %46 = arith.negf %45 : vector<8x64xf32>
    %47 = math.exp %46 : vector<8x64xf32>
    %cst_17 = arith.constant 1.000000e+00 : f32
    %48 = vector.broadcast %cst_17 : f32 to vector<8x64xf32>
    %49 = arith.addf %48, %47 : vector<8x64xf32>
    %50 = arith.divf %48, %49 : vector<8x64xf32>
    %51 = vector.extract_strided_slice %44 {offsets = [0, 64], sizes = [8, 64], strides = [1, 1]} : vector<8x256xf32> to vector<8x64xf32>
    %52 = arith.negf %51 : vector<8x64xf32>
    %53 = math.exp %52 : vector<8x64xf32>
    %cst_18 = arith.constant 1.000000e+00 : f32
    %54 = vector.broadcast %cst_18 : f32 to vector<8x64xf32>
    %55 = arith.addf %54, %53 : vector<8x64xf32>
    %56 = arith.divf %54, %55 : vector<8x64xf32>
    %57 = vector.extract_strided_slice %44 {offsets = [0, 128], sizes = [8, 64], strides = [1, 1]} : vector<8x256xf32> to vector<8x64xf32>
    %58 = math.tanh %57 : vector<8x64xf32>
    %59 = vector.extract_strided_slice %44 {offsets = [0, 192], sizes = [8, 64], strides = [1, 1]} : vector<8x256xf32> to vector<8x64xf32>
    %60 = arith.negf %59 : vector<8x64xf32>
    %61 = math.exp %60 : vector<8x64xf32>
    %cst_19 = arith.constant 1.000000e+00 : f32
    %62 = vector.broadcast %cst_19 : f32 to vector<8x64xf32>
    %63 = arith.addf %62, %61 : vector<8x64xf32>
    %64 = arith.divf %62, %63 : vector<8x64xf32>
    %65 = arith.mulf %56, %33 : vector<8x64xf32>
    %66 = arith.mulf %50, %58 : vector<8x64xf32>
    %67 = arith.addf %65, %66 : vector<8x64xf32>
    %68 = math.tanh %67 : vector<8x64xf32>
    %69 = arith.mulf %64, %68 : vector<8x64xf32>
    %70 = arith.index_cast %c1_i32 : i32 to index
    %c0_20 = arith.constant 0 : index
    %c0_21 = arith.constant 0 : index
    %71 = vector.load %arg4[%70, %c0_20, %c0_21] : memref<8x8x64xf32, #tpu.memory_space<vmem>>, vector<1x8x64xf32>
    %72 = vector.shape_cast %71 : vector<1x8x64xf32> to vector<8x64xf32>
    %73 = vector.shape_cast %69 : vector<8x64xf32> to vector<1x8x64xf32>
    tpu.vector_store %arg4[%70, %c0_20, %c0_21], %73 {strides = array<i32>} : memref<8x8x64xf32, #tpu.memory_space<vmem>>, vector<1x8x64xf32>,
    %c2_i32 = arith.constant 2 : i32
    %74 = arith.index_cast %c2_i32 : i32 to index
    %c0_22 = arith.constant 0 : index
    %c0_23 = arith.constant 0 : index
    %75 = vector.load %arg2[%74, %c0_22, %c0_23] : memref<8x8x256xf32, #tpu.memory_space<vmem>>, vector<1x8x256xf32>
    %76 = vector.shape_cast %75 : vector<1x8x256xf32> to vector<8x256xf32>
    %cst_24 = arith.constant dense<0.000000e+00> : vector<8x256xf32>
    %77 = tpu.matmul %69, %3, %cst_24 {dimension_numbers = #tpu.dot_dimension_numbers<[1], [0], [0], [1], [0, 0, 1, 1], [], []>} : vector<8x64xf32>, vector<64x256xf32>, vector<8x256xf32> -> vector<8x256xf32>
    %78 = arith.addf %76, %77 : vector<8x256xf32>
    %79 = vector.extract_strided_slice %78 {offsets = [0, 0], sizes = [8, 64], strides = [1, 1]} : vector<8x256xf32> to vector<8x64xf32>
    %80 = arith.negf %79 : vector<8x64xf32>
    %81 = math.exp %80 : vector<8x64xf32>
    %cst_25 = arith.constant 1.000000e+00 : f32
    %82 = vector.broadcast %cst_25 : f32 to vector<8x64xf32>
    %83 = arith.addf %82, %81 : vector<8x64xf32>
    %84 = arith.divf %82, %83 : vector<8x64xf32>
    %85 = vector.extract_strided_slice %78 {offsets = [0, 64], sizes = [8, 64], strides = [1, 1]} : vector<8x256xf32> to vector<8x64xf32>
    %86 = arith.negf %85 : vector<8x64xf32>
    %87 = math.exp %86 : vector<8x64xf32>
    %cst_26 = arith.constant 1.000000e+00 : f32
    %88 = vector.broadcast %cst_26 : f32 to vector<8x64xf32>
    %89 = arith.addf %88, %87 : vector<8x64xf32>
    %90 = arith.divf %88, %89 : vector<8x64xf32>
    %91 = vector.extract_strided_slice %78 {offsets = [0, 128], sizes = [8, 64], strides = [1, 1]} : vector<8x256xf32> to vector<8x64xf32>
    %92 = math.tanh %91 : vector<8x64xf32>
    %93 = vector.extract_strided_slice %78 {offsets = [0, 192], sizes = [8, 64], strides = [1, 1]} : vector<8x256xf32> to vector<8x64xf32>
    %94 = arith.negf %93 : vector<8x64xf32>
    %95 = math.exp %94 : vector<8x64xf32>
    %cst_27 = arith.constant 1.000000e+00 : f32
    %96 = vector.broadcast %cst_27 : f32 to vector<8x64xf32>
    %97 = arith.addf %96, %95 : vector<8x64xf32>
    %98 = arith.divf %96, %97 : vector<8x64xf32>
    %99 = arith.mulf %90, %67 : vector<8x64xf32>
    %100 = arith.mulf %84, %92 : vector<8x64xf32>
    %101 = arith.addf %99, %100 : vector<8x64xf32>
    %102 = math.tanh %101 : vector<8x64xf32>
    %103 = arith.mulf %98, %102 : vector<8x64xf32>
    %104 = arith.index_cast %c2_i32 : i32 to index
    %c0_28 = arith.constant 0 : index
    %c0_29 = arith.constant 0 : index
    %105 = vector.load %arg4[%104, %c0_28, %c0_29] : memref<8x8x64xf32, #tpu.memory_space<vmem>>, vector<1x8x64xf32>
    %106 = vector.shape_cast %105 : vector<1x8x64xf32> to vector<8x64xf32>
    %107 = vector.shape_cast %103 : vector<8x64xf32> to vector<1x8x64xf32>
    tpu.vector_store %arg4[%104, %c0_28, %c0_29], %107 {strides = array<i32>} : memref<8x8x64xf32, #tpu.memory_space<vmem>>, vector<1x8x64xf32>,
    %c3_i32 = arith.constant 3 : i32
    %108 = arith.index_cast %c3_i32 : i32 to index
    %c0_30 = arith.constant 0 : index
    %c0_31 = arith.constant 0 : index
    %109 = vector.load %arg2[%108, %c0_30, %c0_31] : memref<8x8x256xf32, #tpu.memory_space<vmem>>, vector<1x8x256xf32>
    %110 = vector.shape_cast %109 : vector<1x8x256xf32> to vector<8x256xf32>
    %cst_32 = arith.constant dense<0.000000e+00> : vector<8x256xf32>
    %111 = tpu.matmul %103, %3, %cst_32 {dimension_numbers = #tpu.dot_dimension_numbers<[1], [0], [0], [1], [0, 0, 1, 1], [], []>} : vector<8x64xf32>, vector<64x256xf32>, vector<8x256xf32> -> vector<8x256xf32>
    %112 = arith.addf %110, %111 : vector<8x256xf32>
    %113 = vector.extract_strided_slice %112 {offsets = [0, 0], sizes = [8, 64], strides = [1, 1]} : vector<8x256xf32> to vector<8x64xf32>
    %114 = arith.negf %113 : vector<8x64xf32>
    %115 = math.exp %114 : vector<8x64xf32>
    %cst_33 = arith.constant 1.000000e+00 : f32
    %116 = vector.broadcast %cst_33 : f32 to vector<8x64xf32>
    %117 = arith.addf %116, %115 : vector<8x64xf32>
    %118 = arith.divf %116, %117 : vector<8x64xf32>
    %119 = vector.extract_strided_slice %112 {offsets = [0, 64], sizes = [8, 64], strides = [1, 1]} : vector<8x256xf32> to vector<8x64xf32>
    %120 = arith.negf %119 : vector<8x64xf32>
    %121 = math.exp %120 : vector<8x64xf32>
    %cst_34 = arith.constant 1.000000e+00 : f32
    %122 = vector.broadcast %cst_34 : f32 to vector<8x64xf32>
    %123 = arith.addf %122, %121 : vector<8x64xf32>
    %124 = arith.divf %122, %123 : vector<8x64xf32>
    %125 = vector.extract_strided_slice %112 {offsets = [0, 128], sizes = [8, 64], strides = [1, 1]} : vector<8x256xf32> to vector<8x64xf32>
    %126 = math.tanh %125 : vector<8x64xf32>
    %127 = vector.extract_strided_slice %112 {offsets = [0, 192], sizes = [8, 64], strides = [1, 1]} : vector<8x256xf32> to vector<8x64xf32>
    %128 = arith.negf %127 : vector<8x64xf32>
    %129 = math.exp %128 : vector<8x64xf32>
    %cst_35 = arith.constant 1.000000e+00 : f32
    %130 = vector.broadcast %cst_35 : f32 to vector<8x64xf32>
    %131 = arith.addf %130, %129 : vector<8x64xf32>
    %132 = arith.divf %130, %131 : vector<8x64xf32>
    %133 = arith.mulf %124, %101 : vector<8x64xf32>
    %134 = arith.mulf %118, %126 : vector<8x64xf32>
    %135 = arith.addf %133, %134 : vector<8x64xf32>
    %136 = math.tanh %135 : vector<8x64xf32>
    %137 = arith.mulf %132, %136 : vector<8x64xf32>
    %138 = arith.index_cast %c3_i32 : i32 to index
    %c0_36 = arith.constant 0 : index
    %c0_37 = arith.constant 0 : index
    %139 = vector.load %arg4[%138, %c0_36, %c0_37] : memref<8x8x64xf32, #tpu.memory_space<vmem>>, vector<1x8x64xf32>
    %140 = vector.shape_cast %139 : vector<1x8x64xf32> to vector<8x64xf32>
    %141 = vector.shape_cast %137 : vector<8x64xf32> to vector<1x8x64xf32>
    tpu.vector_store %arg4[%138, %c0_36, %c0_37], %141 {strides = array<i32>} : memref<8x8x64xf32, #tpu.memory_space<vmem>>, vector<1x8x64xf32>,
    %c4_i32 = arith.constant 4 : i32
    %142 = arith.index_cast %c4_i32 : i32 to index
    %c0_38 = arith.constant 0 : index
    %c0_39 = arith.constant 0 : index
    %143 = vector.load %arg2[%142, %c0_38, %c0_39] : memref<8x8x256xf32, #tpu.memory_space<vmem>>, vector<1x8x256xf32>
    %144 = vector.shape_cast %143 : vector<1x8x256xf32> to vector<8x256xf32>
    %cst_40 = arith.constant dense<0.000000e+00> : vector<8x256xf32>
    %145 = tpu.matmul %137, %3, %cst_40 {dimension_numbers = #tpu.dot_dimension_numbers<[1], [0], [0], [1], [0, 0, 1, 1], [], []>} : vector<8x64xf32>, vector<64x256xf32>, vector<8x256xf32> -> vector<8x256xf32>
    %146 = arith.addf %144, %145 : vector<8x256xf32>
    %147 = vector.extract_strided_slice %146 {offsets = [0, 0], sizes = [8, 64], strides = [1, 1]} : vector<8x256xf32> to vector<8x64xf32>
    %148 = arith.negf %147 : vector<8x64xf32>
    %149 = math.exp %148 : vector<8x64xf32>
    %cst_41 = arith.constant 1.000000e+00 : f32
    %150 = vector.broadcast %cst_41 : f32 to vector<8x64xf32>
    %151 = arith.addf %150, %149 : vector<8x64xf32>
    %152 = arith.divf %150, %151 : vector<8x64xf32>
    %153 = vector.extract_strided_slice %146 {offsets = [0, 64], sizes = [8, 64], strides = [1, 1]} : vector<8x256xf32> to vector<8x64xf32>
    %154 = arith.negf %153 : vector<8x64xf32>
    %155 = math.exp %154 : vector<8x64xf32>
    %cst_42 = arith.constant 1.000000e+00 : f32
    %156 = vector.broadcast %cst_42 : f32 to vector<8x64xf32>
    %157 = arith.addf %156, %155 : vector<8x64xf32>
    %158 = arith.divf %156, %157 : vector<8x64xf32>
    %159 = vector.extract_strided_slice %146 {offsets = [0, 128], sizes = [8, 64], strides = [1, 1]} : vector<8x256xf32> to vector<8x64xf32>
    %160 = math.tanh %159 : vector<8x64xf32>
    %161 = vector.extract_strided_slice %146 {offsets = [0, 192], sizes = [8, 64], strides = [1, 1]} : vector<8x256xf32> to vector<8x64xf32>
    %162 = arith.negf %161 : vector<8x64xf32>
    %163 = math.exp %162 : vector<8x64xf32>
    %cst_43 = arith.constant 1.000000e+00 : f32
    %164 = vector.broadcast %cst_43 : f32 to vector<8x64xf32>
    %165 = arith.addf %164, %163 : vector<8x64xf32>
    %166 = arith.divf %164, %165 : vector<8x64xf32>
    %167 = arith.mulf %158, %135 : vector<8x64xf32>
    %168 = arith.mulf %152, %160 : vector<8x64xf32>
    %169 = arith.addf %167, %168 : vector<8x64xf32>
    %170 = math.tanh %169 : vector<8x64xf32>
    %171 = arith.mulf %166, %170 : vector<8x64xf32>
    %172 = arith.index_cast %c4_i32 : i32 to index
    %c0_44 = arith.constant 0 : index
    %c0_45 = arith.constant 0 : index
    %173 = vector.load %arg4[%172, %c0_44, %c0_45] : memref<8x8x64xf32, #tpu.memory_space<vmem>>, vector<1x8x64xf32>
    %174 = vector.shape_cast %173 : vector<1x8x64xf32> to vector<8x64xf32>
    %175 = vector.shape_cast %171 : vector<8x64xf32> to vector<1x8x64xf32>
    tpu.vector_store %arg4[%172, %c0_44, %c0_45], %175 {strides = array<i32>} : memref<8x8x64xf32, #tpu.memory_space<vmem>>, vector<1x8x64xf32>,
    %c5_i32 = arith.constant 5 : i32
    %176 = arith.index_cast %c5_i32 : i32 to index
    %c0_46 = arith.constant 0 : index
    %c0_47 = arith.constant 0 : index
    %177 = vector.load %arg2[%176, %c0_46, %c0_47] : memref<8x8x256xf32, #tpu.memory_space<vmem>>, vector<1x8x256xf32>
    %178 = vector.shape_cast %177 : vector<1x8x256xf32> to vector<8x256xf32>
    %cst_48 = arith.constant dense<0.000000e+00> : vector<8x256xf32>
    %179 = tpu.matmul %171, %3, %cst_48 {dimension_numbers = #tpu.dot_dimension_numbers<[1], [0], [0], [1], [0, 0, 1, 1], [], []>} : vector<8x64xf32>, vector<64x256xf32>, vector<8x256xf32> -> vector<8x256xf32>
    %180 = arith.addf %178, %179 : vector<8x256xf32>
    %181 = vector.extract_strided_slice %180 {offsets = [0, 0], sizes = [8, 64], strides = [1, 1]} : vector<8x256xf32> to vector<8x64xf32>
    %182 = arith.negf %181 : vector<8x64xf32>
    %183 = math.exp %182 : vector<8x64xf32>
    %cst_49 = arith.constant 1.000000e+00 : f32
    %184 = vector.broadcast %cst_49 : f32 to vector<8x64xf32>
    %185 = arith.addf %184, %183 : vector<8x64xf32>
    %186 = arith.divf %184, %185 : vector<8x64xf32>
    %187 = vector.extract_strided_slice %180 {offsets = [0, 64], sizes = [8, 64], strides = [1, 1]} : vector<8x256xf32> to vector<8x64xf32>
    %188 = arith.negf %187 : vector<8x64xf32>
    %189 = math.exp %188 : vector<8x64xf32>
    %cst_50 = arith.constant 1.000000e+00 : f32
    %190 = vector.broadcast %cst_50 : f32 to vector<8x64xf32>
    %191 = arith.addf %190, %189 : vector<8x64xf32>
    %192 = arith.divf %190, %191 : vector<8x64xf32>
    %193 = vector.extract_strided_slice %180 {offsets = [0, 128], sizes = [8, 64], strides = [1, 1]} : vector<8x256xf32> to vector<8x64xf32>
    %194 = math.tanh %193 : vector<8x64xf32>
    %195 = vector.extract_strided_slice %180 {offsets = [0, 192], sizes = [8, 64], strides = [1, 1]} : vector<8x256xf32> to vector<8x64xf32>
    %196 = arith.negf %195 : vector<8x64xf32>
    %197 = math.exp %196 : vector<8x64xf32>
    %cst_51 = arith.constant 1.000000e+00 : f32
    %198 = vector.broadcast %cst_51 : f32 to vector<8x64xf32>
    %199 = arith.addf %198, %197 : vector<8x64xf32>
    %200 = arith.divf %198, %199 : vector<8x64xf32>
    %201 = arith.mulf %192, %169 : vector<8x64xf32>
    %202 = arith.mulf %186, %194 : vector<8x64xf32>
    %203 = arith.addf %201, %202 : vector<8x64xf32>
    %204 = math.tanh %203 : vector<8x64xf32>
    %205 = arith.mulf %200, %204 : vector<8x64xf32>
    %206 = arith.index_cast %c5_i32 : i32 to index
    %c0_52 = arith.constant 0 : index
    %c0_53 = arith.constant 0 : index
    %207 = vector.load %arg4[%206, %c0_52, %c0_53] : memref<8x8x64xf32, #tpu.memory_space<vmem>>, vector<1x8x64xf32>
    %208 = vector.shape_cast %207 : vector<1x8x64xf32> to vector<8x64xf32>
    %209 = vector.shape_cast %205 : vector<8x64xf32> to vector<1x8x64xf32>
    tpu.vector_store %arg4[%206, %c0_52, %c0_53], %209 {strides = array<i32>} : memref<8x8x64xf32, #tpu.memory_space<vmem>>, vector<1x8x64xf32>,
    %c6_i32 = arith.constant 6 : i32
    %210 = arith.index_cast %c6_i32 : i32 to index
    %c0_54 = arith.constant 0 : index
    %c0_55 = arith.constant 0 : index
    %211 = vector.load %arg2[%210, %c0_54, %c0_55] : memref<8x8x256xf32, #tpu.memory_space<vmem>>, vector<1x8x256xf32>
    %212 = vector.shape_cast %211 : vector<1x8x256xf32> to vector<8x256xf32>
    %cst_56 = arith.constant dense<0.000000e+00> : vector<8x256xf32>
    %213 = tpu.matmul %205, %3, %cst_56 {dimension_numbers = #tpu.dot_dimension_numbers<[1], [0], [0], [1], [0, 0, 1, 1], [], []>} : vector<8x64xf32>, vector<64x256xf32>, vector<8x256xf32> -> vector<8x256xf32>
    %214 = arith.addf %212, %213 : vector<8x256xf32>
    %215 = vector.extract_strided_slice %214 {offsets = [0, 0], sizes = [8, 64], strides = [1, 1]} : vector<8x256xf32> to vector<8x64xf32>
    %216 = arith.negf %215 : vector<8x64xf32>
    %217 = math.exp %216 : vector<8x64xf32>
    %cst_57 = arith.constant 1.000000e+00 : f32
    %218 = vector.broadcast %cst_57 : f32 to vector<8x64xf32>
    %219 = arith.addf %218, %217 : vector<8x64xf32>
    %220 = arith.divf %218, %219 : vector<8x64xf32>
    %221 = vector.extract_strided_slice %214 {offsets = [0, 64], sizes = [8, 64], strides = [1, 1]} : vector<8x256xf32> to vector<8x64xf32>
    %222 = arith.negf %221 : vector<8x64xf32>
    %223 = math.exp %222 : vector<8x64xf32>
    %cst_58 = arith.constant 1.000000e+00 : f32
    %224 = vector.broadcast %cst_58 : f32 to vector<8x64xf32>
    %225 = arith.addf %224, %223 : vector<8x64xf32>
    %226 = arith.divf %224, %225 : vector<8x64xf32>
    %227 = vector.extract_strided_slice %214 {offsets = [0, 128], sizes = [8, 64], strides = [1, 1]} : vector<8x256xf32> to vector<8x64xf32>
    %228 = math.tanh %227 : vector<8x64xf32>
    %229 = vector.extract_strided_slice %214 {offsets = [0, 192], sizes = [8, 64], strides = [1, 1]} : vector<8x256xf32> to vector<8x64xf32>
    %230 = arith.negf %229 : vector<8x64xf32>
    %231 = math.exp %230 : vector<8x64xf32>
    %cst_59 = arith.constant 1.000000e+00 : f32
    %232 = vector.broadcast %cst_59 : f32 to vector<8x64xf32>
    %233 = arith.addf %232, %231 : vector<8x64xf32>
    %234 = arith.divf %232, %233 : vector<8x64xf32>
    %235 = arith.mulf %226, %203 : vector<8x64xf32>
    %236 = arith.mulf %220, %228 : vector<8x64xf32>
    %237 = arith.addf %235, %236 : vector<8x64xf32>
    %238 = math.tanh %237 : vector<8x64xf32>
    %239 = arith.mulf %234, %238 : vector<8x64xf32>
    %240 = arith.index_cast %c6_i32 : i32 to index
    %c0_60 = arith.constant 0 : index
    %c0_61 = arith.constant 0 : index
    %241 = vector.load %arg4[%240, %c0_60, %c0_61] : memref<8x8x64xf32, #tpu.memory_space<vmem>>, vector<1x8x64xf32>
    %242 = vector.shape_cast %241 : vector<1x8x64xf32> to vector<8x64xf32>
    %243 = vector.shape_cast %239 : vector<8x64xf32> to vector<1x8x64xf32>
    tpu.vector_store %arg4[%240, %c0_60, %c0_61], %243 {strides = array<i32>} : memref<8x8x64xf32, #tpu.memory_space<vmem>>, vector<1x8x64xf32>,
    %c7_i32 = arith.constant 7 : i32
    %244 = arith.index_cast %c7_i32 : i32 to index
    %c0_62 = arith.constant 0 : index
    %c0_63 = arith.constant 0 : index
    %245 = vector.load %arg2[%244, %c0_62, %c0_63] : memref<8x8x256xf32, #tpu.memory_space<vmem>>, vector<1x8x256xf32>
    %246 = vector.shape_cast %245 : vector<1x8x256xf32> to vector<8x256xf32>
    %cst_64 = arith.constant dense<0.000000e+00> : vector<8x256xf32>
    %247 = tpu.matmul %239, %3, %cst_64 {dimension_numbers = #tpu.dot_dimension_numbers<[1], [0], [0], [1], [0, 0, 1, 1], [], []>} : vector<8x64xf32>, vector<64x256xf32>, vector<8x256xf32> -> vector<8x256xf32>
    %248 = arith.addf %246, %247 : vector<8x256xf32>
    %249 = vector.extract_strided_slice %248 {offsets = [0, 0], sizes = [8, 64], strides = [1, 1]} : vector<8x256xf32> to vector<8x64xf32>
    %250 = arith.negf %249 : vector<8x64xf32>
    %251 = math.exp %250 : vector<8x64xf32>
    %cst_65 = arith.constant 1.000000e+00 : f32
    %252 = vector.broadcast %cst_65 : f32 to vector<8x64xf32>
    %253 = arith.addf %252, %251 : vector<8x64xf32>
    %254 = arith.divf %252, %253 : vector<8x64xf32>
    %255 = vector.extract_strided_slice %248 {offsets = [0, 64], sizes = [8, 64], strides = [1, 1]} : vector<8x256xf32> to vector<8x64xf32>
    %256 = arith.negf %255 : vector<8x64xf32>
    %257 = math.exp %256 : vector<8x64xf32>
    %cst_66 = arith.constant 1.000000e+00 : f32
    %258 = vector.broadcast %cst_66 : f32 to vector<8x64xf32>
    %259 = arith.addf %258, %257 : vector<8x64xf32>
    %260 = arith.divf %258, %259 : vector<8x64xf32>
    %261 = vector.extract_strided_slice %248 {offsets = [0, 128], sizes = [8, 64], strides = [1, 1]} : vector<8x256xf32> to vector<8x64xf32>
    %262 = math.tanh %261 : vector<8x64xf32>
    %263 = vector.extract_strided_slice %248 {offsets = [0, 192], sizes = [8, 64], strides = [1, 1]} : vector<8x256xf32> to vector<8x64xf32>
    %264 = arith.negf %263 : vector<8x64xf32>
    %265 = math.exp %264 : vector<8x64xf32>
    %cst_67 = arith.constant 1.000000e+00 : f32
    %266 = vector.broadcast %cst_67 : f32 to vector<8x64xf32>
    %267 = arith.addf %266, %265 : vector<8x64xf32>
    %268 = arith.divf %266, %267 : vector<8x64xf32>
    %269 = arith.mulf %260, %237 : vector<8x64xf32>
    %270 = arith.mulf %254, %262 : vector<8x64xf32>
    %271 = arith.addf %269, %270 : vector<8x64xf32>
    %272 = math.tanh %271 : vector<8x64xf32>
    %273 = arith.mulf %268, %272 : vector<8x64xf32>
    %274 = arith.index_cast %c7_i32 : i32 to index
    %c0_68 = arith.constant 0 : index
    %c0_69 = arith.constant 0 : index
    %275 = vector.load %arg4[%274, %c0_68, %c0_69] : memref<8x8x64xf32, #tpu.memory_space<vmem>>, vector<1x8x64xf32>
    %276 = vector.shape_cast %275 : vector<1x8x64xf32> to vector<8x64xf32>
    %277 = vector.shape_cast %273 : vector<8x64xf32> to vector<1x8x64xf32>
    tpu.vector_store %arg4[%274, %c0_68, %c0_69], %277 {strides = array<i32>} : memref<8x8x64xf32, #tpu.memory_space<vmem>>, vector<1x8x64xf32>,
    %c8_i32 = arith.constant 8 : i32
    %c0_70 = arith.constant 0 : index
    %c0_71 = arith.constant 0 : index
    %278 = vector.load %arg5[%c0_70, %c0_71] : memref<8x64xf32, #tpu.memory_space<vmem>>, vector<8x64xf32>
    tpu.vector_store %arg5[%c0_70, %c0_71], %273 {strides = array<i32>} : memref<8x64xf32, #tpu.memory_space<vmem>>, vector<8x64xf32>,
    %c0_72 = arith.constant 0 : index
    %c0_73 = arith.constant 0 : index
    %279 = vector.load %arg6[%c0_72, %c0_73] : memref<8x64xf32, #tpu.memory_space<vmem>>, vector<8x64xf32>
    tpu.vector_store %arg6[%c0_72, %c0_73], %271 {strides = array<i32>} : memref<8x64xf32, #tpu.memory_space<vmem>>, vector<8x64xf32>,
    return
  }
  func.func @transform_0(%arg0: i32, %arg1: i32) -> (i32, i32, i32) {
    %c0_i32 = arith.constant 0 : i32
    %c0_i32_0 = arith.constant 0 : i32
    return %arg1, %arg0, %c0_i32 : i32, i32, i32
  }
  func.func @transform_1(%arg0: i32, %arg1: i32) -> (i32, i32) {
    %c0_i32 = arith.constant 0 : i32
    %c0_i32_0 = arith.constant 0 : i32
    %c0_i32_1 = arith.constant 0 : i32
    return %c0_i32, %c0_i32_0 : i32, i32
  }
  func.func @transform_2(%arg0: i32, %arg1: i32) -> (i32, i32, i32) {
    %c0_i32 = arith.constant 0 : i32
    %c0_i32_0 = arith.constant 0 : i32
    return %arg1, %arg0, %c0_i32 : i32, i32, i32
  }
}

module attributes {stable_mosaic.version = 11 : i64} {
  func.func @_encoder_gates_kernel(%arg0: i32, %arg1: memref<8x8x10xf32, #tpu.memory_space<vmem>>, %arg2: memref<10x64xf32, #tpu.memory_space<vmem>>, %arg3: memref<1x64xf32, #tpu.memory_space<vmem>>, %arg4: memref<64x64xf32, #tpu.memory_space<vmem>>, %arg5: memref<1x64xf32, #tpu.memory_space<vmem>>, %arg6: memref<64x64xf32, #tpu.memory_space<vmem>>, %arg7: memref<1x64xf32, #tpu.memory_space<vmem>>, %arg8: memref<64x256xf32, #tpu.memory_space<vmem>>, %arg9: memref<1x256xf32, #tpu.memory_space<vmem>>, %arg10: memref<8x8x256xf32, #tpu.memory_space<vmem>>) attributes {dimension_semantics = [#tpu.dimension_semantics<parallel>], iteration_bounds = array<i64: 1>, scalar_prefetch = 0 : i64, scratch_operands = 0 : i64, tpu.core_type = #tpu.core_type<tc>, window_params = [{transform_indices = @transform_0, window_bounds = array<i64: 8, 8, 10>}, {pipeline_mode = #tpu.pipeline_mode<synchronous>, transform_indices = @transform_1, window_bounds = array<i64: 10, 64>}, {pipeline_mode = #tpu.pipeline_mode<synchronous>, transform_indices = @transform_2, window_bounds = array<i64: 1, 64>}, {pipeline_mode = #tpu.pipeline_mode<synchronous>, transform_indices = @transform_3, window_bounds = array<i64: 64, 64>}, {pipeline_mode = #tpu.pipeline_mode<synchronous>, transform_indices = @transform_4, window_bounds = array<i64: 1, 64>}, {pipeline_mode = #tpu.pipeline_mode<synchronous>, transform_indices = @transform_5, window_bounds = array<i64: 64, 64>}, {pipeline_mode = #tpu.pipeline_mode<synchronous>, transform_indices = @transform_6, window_bounds = array<i64: 1, 64>}, {pipeline_mode = #tpu.pipeline_mode<synchronous>, transform_indices = @transform_7, window_bounds = array<i64: 64, 256>}, {pipeline_mode = #tpu.pipeline_mode<synchronous>, transform_indices = @transform_8, window_bounds = array<i64: 1, 256>}, {transform_indices = @transform_9, window_bounds = array<i64: 8, 8, 256>}]} {
    %c0 = arith.constant 0 : index
    %c0_0 = arith.constant 0 : index
    %c0_1 = arith.constant 0 : index
    %0 = vector.load %arg1[%c0, %c0_0, %c0_1] : memref<8x8x10xf32, #tpu.memory_space<vmem>>, vector<8x8x10xf32>
    %1 = vector.shape_cast %0 : vector<8x8x10xf32> to vector<64x10xf32>
    %c0_2 = arith.constant 0 : index
    %c0_3 = arith.constant 0 : index
    %2 = vector.load %arg2[%c0_2, %c0_3] : memref<10x64xf32, #tpu.memory_space<vmem>>, vector<10x64xf32>
    %cst = arith.constant dense<0.000000e+00> : vector<64x64xf32>
    %3 = tpu.matmul %1, %2, %cst {dimension_numbers = #tpu.dot_dimension_numbers<[1], [0], [0], [1], [0, 0, 1, 1], [], []>} : vector<64x10xf32>, vector<10x64xf32>, vector<64x64xf32> -> vector<64x64xf32>
    %c0_4 = arith.constant 0 : index
    %c0_5 = arith.constant 0 : index
    %4 = vector.load %arg3[%c0_4, %c0_5] : memref<1x64xf32, #tpu.memory_space<vmem>>, vector<1x64xf32>
    %5 = vector.broadcast %4 : vector<1x64xf32> to vector<64x64xf32>
    %6 = arith.addf %3, %5 : vector<64x64xf32>
    %7 = math.tanh %6 : vector<64x64xf32>
    %c0_6 = arith.constant 0 : index
    %c0_7 = arith.constant 0 : index
    %8 = vector.load %arg4[%c0_6, %c0_7] : memref<64x64xf32, #tpu.memory_space<vmem>>, vector<64x64xf32>
    %cst_8 = arith.constant dense<0.000000e+00> : vector<64x64xf32>
    %9 = tpu.matmul %7, %8, %cst_8 {dimension_numbers = #tpu.dot_dimension_numbers<[1], [0], [0], [1], [0, 0, 1, 1], [], []>} : vector<64x64xf32>, vector<64x64xf32>, vector<64x64xf32> -> vector<64x64xf32>
    %c0_9 = arith.constant 0 : index
    %c0_10 = arith.constant 0 : index
    %10 = vector.load %arg5[%c0_9, %c0_10] : memref<1x64xf32, #tpu.memory_space<vmem>>, vector<1x64xf32>
    %11 = vector.broadcast %10 : vector<1x64xf32> to vector<64x64xf32>
    %12 = arith.addf %9, %11 : vector<64x64xf32>
    %13 = math.tanh %12 : vector<64x64xf32>
    %c0_11 = arith.constant 0 : index
    %c0_12 = arith.constant 0 : index
    %14 = vector.load %arg6[%c0_11, %c0_12] : memref<64x64xf32, #tpu.memory_space<vmem>>, vector<64x64xf32>
    %cst_13 = arith.constant dense<0.000000e+00> : vector<64x64xf32>
    %15 = tpu.matmul %13, %14, %cst_13 {dimension_numbers = #tpu.dot_dimension_numbers<[1], [0], [0], [1], [0, 0, 1, 1], [], []>} : vector<64x64xf32>, vector<64x64xf32>, vector<64x64xf32> -> vector<64x64xf32>
    %c0_14 = arith.constant 0 : index
    %c0_15 = arith.constant 0 : index
    %16 = vector.load %arg7[%c0_14, %c0_15] : memref<1x64xf32, #tpu.memory_space<vmem>>, vector<1x64xf32>
    %17 = vector.broadcast %16 : vector<1x64xf32> to vector<64x64xf32>
    %18 = arith.addf %15, %17 : vector<64x64xf32>
    %c0_16 = arith.constant 0 : index
    %c0_17 = arith.constant 0 : index
    %19 = vector.load %arg8[%c0_16, %c0_17] : memref<64x256xf32, #tpu.memory_space<vmem>>, vector<64x256xf32>
    %cst_18 = arith.constant dense<0.000000e+00> : vector<64x256xf32>
    %20 = tpu.matmul %18, %19, %cst_18 {dimension_numbers = #tpu.dot_dimension_numbers<[1], [0], [0], [1], [0, 0, 1, 1], [], []>} : vector<64x64xf32>, vector<64x256xf32>, vector<64x256xf32> -> vector<64x256xf32>
    %c0_19 = arith.constant 0 : index
    %c0_20 = arith.constant 0 : index
    %21 = vector.load %arg9[%c0_19, %c0_20] : memref<1x256xf32, #tpu.memory_space<vmem>>, vector<1x256xf32>
    %22 = vector.broadcast %21 : vector<1x256xf32> to vector<64x256xf32>
    %23 = arith.addf %20, %22 : vector<64x256xf32>
    %24 = vector.shape_cast %23 : vector<64x256xf32> to vector<8x8x256xf32>
    %c0_21 = arith.constant 0 : index
    %c0_22 = arith.constant 0 : index
    %c0_23 = arith.constant 0 : index
    %25 = vector.load %arg10[%c0_21, %c0_22, %c0_23] : memref<8x8x256xf32, #tpu.memory_space<vmem>>, vector<8x8x256xf32>
    tpu.vector_store %arg10[%c0_21, %c0_22, %c0_23], %24 {strides = array<i32>} : memref<8x8x256xf32, #tpu.memory_space<vmem>>, vector<8x8x256xf32>,
    return
  }
  func.func @transform_0(%arg0: i32) -> (i32, i32, i32) {
    %c0_i32 = arith.constant 0 : i32
    %c0_i32_0 = arith.constant 0 : i32
    %c0_i32_1 = arith.constant 0 : i32
    return %arg0, %c0_i32, %c0_i32_0 : i32, i32, i32
  }
  func.func @transform_1(%arg0: i32) -> (i32, i32) {
    %c0_i32 = arith.constant 0 : i32
    %c0_i32_0 = arith.constant 0 : i32
    %c0_i32_1 = arith.constant 0 : i32
    return %c0_i32, %c0_i32_0 : i32, i32
  }
  func.func @transform_2(%arg0: i32) -> (i32, i32) {
    %c0_i32 = arith.constant 0 : i32
    %c0_i32_0 = arith.constant 0 : i32
    %c0_i32_1 = arith.constant 0 : i32
    return %c0_i32, %c0_i32_0 : i32, i32
  }
  func.func @transform_3(%arg0: i32) -> (i32, i32) {
    %c0_i32 = arith.constant 0 : i32
    %c0_i32_0 = arith.constant 0 : i32
    %c0_i32_1 = arith.constant 0 : i32
    return %c0_i32, %c0_i32_0 : i32, i32
  }
  func.func @transform_4(%arg0: i32) -> (i32, i32) {
    %c0_i32 = arith.constant 0 : i32
    %c0_i32_0 = arith.constant 0 : i32
    %c0_i32_1 = arith.constant 0 : i32
    return %c0_i32, %c0_i32_0 : i32, i32
  }
  func.func @transform_5(%arg0: i32) -> (i32, i32) {
    %c0_i32 = arith.constant 0 : i32
    %c0_i32_0 = arith.constant 0 : i32
    %c0_i32_1 = arith.constant 0 : i32
    return %c0_i32, %c0_i32_0 : i32, i32
  }
  func.func @transform_6(%arg0: i32) -> (i32, i32) {
    %c0_i32 = arith.constant 0 : i32
    %c0_i32_0 = arith.constant 0 : i32
    %c0_i32_1 = arith.constant 0 : i32
    return %c0_i32, %c0_i32_0 : i32, i32
  }
  func.func @transform_7(%arg0: i32) -> (i32, i32) {
    %c0_i32 = arith.constant 0 : i32
    %c0_i32_0 = arith.constant 0 : i32
    %c0_i32_1 = arith.constant 0 : i32
    return %c0_i32, %c0_i32_0 : i32, i32
  }
  func.func @transform_8(%arg0: i32) -> (i32, i32) {
    %c0_i32 = arith.constant 0 : i32
    %c0_i32_0 = arith.constant 0 : i32
    %c0_i32_1 = arith.constant 0 : i32
    return %c0_i32, %c0_i32_0 : i32, i32
  }
  func.func @transform_9(%arg0: i32) -> (i32, i32, i32) {
    %c0_i32 = arith.constant 0 : i32
    %c0_i32_0 = arith.constant 0 : i32
    %c0_i32_1 = arith.constant 0 : i32
    return %arg0, %c0_i32, %c0_i32_0 : i32, i32, i32
  }
}

module attributes {stable_mosaic.version = 11 : i64} {
  func.func @_head_kernel(%arg0: i32, %arg1: memref<8x8x64xf32, #tpu.memory_space<vmem>>, %arg2: memref<8x8x5xf32, #tpu.memory_space<vmem>>, %arg3: memref<64x5xf32, #tpu.memory_space<vmem>>, %arg4: memref<1x5xf32, #tpu.memory_space<vmem>>, %arg5: memref<8x8x5xf32, #tpu.memory_space<vmem>>) attributes {dimension_semantics = [#tpu.dimension_semantics<parallel>], iteration_bounds = array<i64: 1>, scalar_prefetch = 0 : i64, scratch_operands = 0 : i64, tpu.core_type = #tpu.core_type<tc>, window_params = [{transform_indices = @transform_0, window_bounds = array<i64: 8, 8, 64>}, {transform_indices = @transform_1, window_bounds = array<i64: 8, 8, 5>}, {pipeline_mode = #tpu.pipeline_mode<synchronous>, transform_indices = @transform_2, window_bounds = array<i64: 64, 5>}, {pipeline_mode = #tpu.pipeline_mode<synchronous>, transform_indices = @transform_3, window_bounds = array<i64: 1, 5>}, {transform_indices = @transform_4, window_bounds = array<i64: 8, 8, 5>}]} {
    %c0 = arith.constant 0 : index
    %c0_0 = arith.constant 0 : index
    %c0_1 = arith.constant 0 : index
    %0 = vector.load %arg1[%c0, %c0_0, %c0_1] : memref<8x8x64xf32, #tpu.memory_space<vmem>>, vector<8x8x64xf32>
    %1 = vector.shape_cast %0 : vector<8x8x64xf32> to vector<64x64xf32>
    %c0_2 = arith.constant 0 : index
    %c0_3 = arith.constant 0 : index
    %2 = vector.load %arg3[%c0_2, %c0_3] : memref<64x5xf32, #tpu.memory_space<vmem>>, vector<64x5xf32>
    %cst = arith.constant dense<0.000000e+00> : vector<64x5xf32>
    %3 = tpu.matmul %1, %2, %cst {dimension_numbers = #tpu.dot_dimension_numbers<[1], [0], [0], [1], [0, 0, 1, 1], [], []>} : vector<64x64xf32>, vector<64x5xf32>, vector<64x5xf32> -> vector<64x5xf32>
    %c0_4 = arith.constant 0 : index
    %c0_5 = arith.constant 0 : index
    %4 = vector.load %arg4[%c0_4, %c0_5] : memref<1x5xf32, #tpu.memory_space<vmem>>, vector<1x5xf32>
    %5 = vector.broadcast %4 : vector<1x5xf32> to vector<64x5xf32>
    %6 = arith.addf %3, %5 : vector<64x5xf32>
    %cst_6 = arith.constant dense<0xFF800000> : vector<64xf32>
    %7 = vector.multi_reduction <maximumf>, %6, %cst_6 [1] : vector<64x5xf32> to vector<64xf32>
    %8 = vector.shape_cast %7 : vector<64xf32> to vector<64x1xf32>
    %9 = vector.broadcast %8 : vector<64x1xf32> to vector<64x5xf32>
    %10 = arith.subf %6, %9 : vector<64x5xf32>
    %11 = math.exp %10 : vector<64x5xf32>
    %cst_7 = arith.constant dense<0.000000e+00> : vector<64xf32>
    %12 = vector.multi_reduction <add>, %11, %cst_7 [1] : vector<64x5xf32> to vector<64xf32>
    %13 = vector.shape_cast %12 : vector<64xf32> to vector<64x1xf32>
    %14 = tpu.reciprocal %13 : vector<64x1xf32> -> vector<64x1xf32>
    %15 = vector.broadcast %14 : vector<64x1xf32> to vector<64x5xf32>
    %16 = arith.mulf %11, %15 : vector<64x5xf32>
    %c0_8 = arith.constant 0 : index
    %c0_9 = arith.constant 0 : index
    %c0_10 = arith.constant 0 : index
    %17 = vector.load %arg2[%c0_8, %c0_9, %c0_10] : memref<8x8x5xf32, #tpu.memory_space<vmem>>, vector<8x8x5xf32>
    %18 = vector.shape_cast %17 : vector<8x8x5xf32> to vector<64x5xf32>
    %19 = arith.mulf %16, %18 : vector<64x5xf32>
    %cst_11 = arith.constant dense<0.000000e+00> : vector<64xf32>
    %20 = vector.multi_reduction <add>, %19, %cst_11 [1] : vector<64x5xf32> to vector<64xf32>
    %21 = vector.shape_cast %20 : vector<64xf32> to vector<64x1xf32>
    %22 = tpu.reciprocal %21 : vector<64x1xf32> -> vector<64x1xf32>
    %23 = vector.broadcast %22 : vector<64x1xf32> to vector<64x5xf32>
    %24 = arith.mulf %19, %23 : vector<64x5xf32>
    %25 = vector.shape_cast %24 : vector<64x5xf32> to vector<8x8x5xf32>
    %c0_12 = arith.constant 0 : index
    %c0_13 = arith.constant 0 : index
    %c0_14 = arith.constant 0 : index
    %26 = vector.load %arg5[%c0_12, %c0_13, %c0_14] : memref<8x8x5xf32, #tpu.memory_space<vmem>>, vector<8x8x5xf32>
    tpu.vector_store %arg5[%c0_12, %c0_13, %c0_14], %25 {strides = array<i32>} : memref<8x8x5xf32, #tpu.memory_space<vmem>>, vector<8x8x5xf32>,
    return
  }
  func.func @transform_0(%arg0: i32) -> (i32, i32, i32) {
    %c0_i32 = arith.constant 0 : i32
    %c0_i32_0 = arith.constant 0 : i32
    %c0_i32_1 = arith.constant 0 : i32
    return %arg0, %c0_i32, %c0_i32_0 : i32, i32, i32
  }
  func.func @transform_1(%arg0: i32) -> (i32, i32, i32) {
    %c0_i32 = arith.constant 0 : i32
    %c0_i32_0 = arith.constant 0 : i32
    %c0_i32_1 = arith.constant 0 : i32
    return %arg0, %c0_i32, %c0_i32_0 : i32, i32, i32
  }
  func.func @transform_2(%arg0: i32) -> (i32, i32) {
    %c0_i32 = arith.constant 0 : i32
    %c0_i32_0 = arith.constant 0 : i32
    %c0_i32_1 = arith.constant 0 : i32
    return %c0_i32, %c0_i32_0 : i32, i32
  }
  func.func @transform_3(%arg0: i32) -> (i32, i32) {
    %c0_i32 = arith.constant 0 : i32
    %c0_i32_0 = arith.constant 0 : i32
    %c0_i32_1 = arith.constant 0 : i32
    return %c0_i32, %c0_i32_0 : i32, i32
  }
  func.func @transform_4(%arg0: i32) -> (i32, i32, i32) {
    %c0_i32 = arith.constant 0 : i32
    %c0_i32_0 = arith.constant 0 : i32
    %c0_i32_1 = arith.constant 0 : i32
    return %arg0, %c0_i32, %c0_i32_0 : i32, i32, i32
  }
}

</mosaic_0001>

<bundles_post_ra>
// kernel: dec_categorical_lstm_policy_forward.4
= control target key start
LH: loop header
LB: loop body
LE: loop exit
PB: predicated region body
PF: predicated region fallthrough
CT: control target
= control target key end

     0   :  { %vm15_vm0 = vcmask 523264   ;;  %v1041_v3 = vmov 0.0   ;;  %s1042_s3 = smov 64   ;;  %s1386_s1 = inlined_call_operand.vmem [shape: f32[64,256], index: 1, kind: input, shape index: {}]   ;;  %s1387_s0 = inlined_call_operand.vmem [shape: f32[8,8,256], index: 0, kind: input, shape index: {}]   ;;  %s1388_s2 = inlined_call_operand.vmem [shape: f32[8,8,64], index: 2, kind: output, shape index: {}]  }
   0x1   :  { %v1061_v0 = vld [vmem:[%s1386_s1 + $0x78] sm:$0xff]  ;;  %v1066_v1 = vld [vmem:[%s1386_s1 + $0x70] sm:$0xff]  ;;  %v1071_v2 = vld [vmem:[%s1386_s1 + $0x68] sm:$0xff]  ;;  %106 = vmatprep.mubr.f32.mxu0 %v1041_v3  ;;  %16 = vst.msk [vmem:[#allocation2] sm:$0xff] %vm15_vm0, %v1041_v3  ;;  %215 = vmatprep.mubr.f32.mxu1 %v1041_v3 }
   0x2   :  { %17 = vst.msk [vmem:[#allocation3] sm:$0xff] %vm15_vm0, %v1041_v3  ;;  %58 = vmatprep.subr.mxu0 %v1061_v0  ;;  %v1083_v4 = vld [vmem:[%s1386_s1 + $0x60] sm:$0xff]  ;;  %167 = vmatprep.subr.mxu1 %v1061_v0  ;;  %v1090_v5 = vld [vmem:[%s1386_s1 + $0x58] sm:$0xff]  ;;  %v1097_v6 = vld [vmem:[%s1386_s1 + $0x50] sm:$0xff] }
   0x3   :  { %59 = vmatpush1.msra.mxu0 %v1066_v1  ;;  %168 = vmatpush1.msra.mxu1 %v1066_v1  ;;  %v1104_v7 = vld [vmem:[%s1386_s1 + $0x48] sm:$0xff]  ;;  %v1111_v8 = vld [vmem:[%s1386_s1 + $0x40] sm:$0xff]  ;;  %v1118_v9 = vld [vmem:[%s1386_s1 + $0x38] sm:$0xff] }
   0x4   :  { %60 = vmatprep.subr.mxu0 %v1071_v2  ;;  %169 = vmatprep.subr.mxu1 %v1071_v2  ;;  %v1125_v10 = vld [vmem:[%s1386_s1 + $0x30] sm:$0xff]  ;;  %v1132_v12 = vld [vmem:[%s1386_s1 + $0x28] sm:$0xff]  ;;  %v1139_v13 = vld [vmem:[%s1386_s1 + $0x20] sm:$0xff] }
   0x5   :  { %61 = vmatpush1.msra.mxu0 %v1083_v4  ;;  %170 = vmatpush1.msra.mxu1 %v1083_v4  ;;  %v1146_v14 = vld [vmem:[%s1386_s1 + $0x18] sm:$0xff]  ;;  %v1153_v15 = vld [vmem:[%s1386_s1 + $0x10] sm:$0xff]  ;;  %v1160_v16 = vld [vmem:[%s1386_s1 + $0x8] sm:$0xff] }
   0x6   :  { %62 = vmatprep.subr.mxu0 %v1090_v5  ;;  %171 = vmatprep.subr.mxu1 %v1090_v5  ;;  %v1167_v17 = vld [vmem:[%s1386_s1] sm:$0xff]  ;;  %v37_v23 = vld [vmem:[%s1387_s0 + $0x8] sm:$0xff]  ;;  %v901_v42 = vld [vmem:[%s1387_s0 + $0x10] sm:$0xff] }
   0x7   :  { %63 = vmatpush1.msra.mxu0 %v1097_v6  ;;  %172 = vmatpush1.msra.mxu1 %v1097_v6  ;;  %v36_v19 = vld [vmem:[%s1387_s0] sm:$0xff]  ;;  %v902_v46 = vld [vmem:[%s1387_s0 + $0x18] sm:$0xff] }
   0x8   :  { %64 = vmatprep.subr.mxu0 %v1104_v7  ;;  %173 = vmatprep.subr.mxu1 %v1104_v7  ;;  %v34_v18 = vld [vmem:[#allocation2] sm:$0xff] }
   0x9   :  { %v35_v11 = vld [vmem:[#allocation3] sm:$0xff]  ;;  %65 = vmatpush1.msra.mxu0 %v1111_v8  ;;  %174 = vmatpush1.msra.mxu1 %v1111_v8 }
   0xa   :  { %129 = vrot.lane.b32.xlu0 %v35_v11, %s1042_s3  ;;  %66 = vmatprep.subr.mxu0 %v1118_v9  ;;  %v907_v11 = vld [vmem:[%s1387_s0 + $0x20] sm:$0xff] }
   0xb   :  { %67 = vmatpush1.msra.mxu0 %v1125_v10  ;;  %175 = vmatprep.subr.mxu1 %v1118_v9 }
   0xc   :  { %68 = vmatprep.subr.mxu0 %v1132_v12  ;;  %176 = vmatpush1.msra.mxu1 %v1125_v10 }
   0xd   :  { %69 = vmatpush1.msra.mxu0 %v1139_v13  ;;  %177 = vmatprep.subr.mxu1 %v1132_v12 }
   0xe   :  { %70 = vmatprep.subr.mxu0 %v1146_v14  ;;  %178 = vmatpush1.msra.mxu1 %v1139_v13 }
   0xf   :  { %71 = vmatpush1.msra.mxu0 %v1153_v15  ;;  %179 = vmatprep.subr.mxu1 %v1146_v14 }
  0x10   :  { %72 = vmatprep.subr.mxu0 %v1160_v16  ;;  %180 = vmatpush1.msra.mxu1 %v1153_v15 }
  0x11   :  { %73 = vmatpush1.msra.mxu0 %v1167_v17  ;;  %181 = vmatprep.subr.mxu1 %v1160_v16 }
  0x12   :  { %898 = vmatmul.mubr.msk.f32.vlgmr.msra.gmra.mxu0 %vm15_vm0, %v34_v18  ;;  %182 = vmatpush1.msra.mxu1 %v1167_v17 }
  0x13   :  { %273 = vmatprep.subr.mxu0 %v1061_v0  ;;  %321 = vmatprep.mubr.f32.mxu0 %v1041_v3 }
  0x14   :  { %274 = vmatpush1.msra.mxu0 %v1066_v1  ;;  %379 = vmatprep.subr.mxu1 %v1061_v0 }
  0x15   :  { %275 = vmatprep.subr.mxu0 %v1071_v2 }
  0x16   :  { %276 = vmatpush1.msra.mxu0 %v1083_v4 }
  0x17   :  { %277 = vmatprep.subr.mxu0 %v1090_v5 }
  0x18   :  { %278 = vmatpush1.msra.mxu0 %v1097_v6 }
  0x19   :  { %279 = vmatprep.subr.mxu0 %v1104_v7 }
  0x1a   :  { %280 = vmatpush1.msra.mxu0 %v1111_v8 }
  0x1b   :  { %281 = vmatprep.subr.mxu0 %v1118_v9 }
  0x1c   :  { %282 = vmatpush1.msra.mxu0 %v1125_v10 }
  0x1d   :  { %283 = vmatprep.subr.mxu0 %v1132_v12 }
  0x1e   :  { %284 = vmatpush1.msra.mxu0 %v1139_v13 }
  0x1f   :  { %285 = vmatprep.subr.mxu0 %v1146_v14 }
  0x20   :  { %286 = vmatpush1.msra.mxu0 %v1153_v15 }
  0x21   :  { %287 = vmatprep.subr.mxu0 %v1160_v16 }
  0x22   :  { %288 = vmatpush1.msra.mxu0 %v1167_v17 }
  0x23   :  { %485 = vmatprep.subr.mxu0 %v1061_v0 }
  0x7c   :  { %v130_v33 = vpop.permute.xlu0 %129 }
  0xd2   :  { %v108_v20 = vpop.f32.mrf.mxu0 }
  0xd3   :  { %v113_v21 = vadd.f32 %v108_v20, %v36_v19 }
  0xd4   :  { %v110_v24 = vpop.f32.mrf.mxu0 }
  0xd5   :  { %v899_v22 = vmul.f32 -1.442695, %v113_v21  ;;  %v114_v25 = vadd.f32 %v110_v24, %v37_v23  ;;  %v908_v21 = vld [vmem:[%s1387_s0 + $0x28] sm:$0xff] }
  0xd7   :  { %945 = vpow2.f32 %v899_v22  ;;  %v900_v31 = vmul.f32 -1.442695, %v114_v25 }
  0xd8   :  { %947 = vtanh.f32 %v114_v25 }
  0xe4   :  { %v946_v26 = vpop.eup %945 }
  0xe5   :  { %v118_v27 = vadd.f32 1.0, %v946_v26  ;;  %v948_v28 = vpop.eup %947 }
  0xe7   :  { %949 = vrcp.f32 %v118_v27 }
  0xe8   :  { %951 = vpow2.f32 %v900_v31 }
  0xf4   :  { %v950_v29 = vpop.eup %949 }
  0xf5   :  { %v133_v30 = vmul.f32 %v950_v29, %v948_v28  ;;  %v952_v32 = vpop.eup %951  ;;  %v132_v35 = vmul.f32 %v950_v29, %v130_v33 }
  0xf6   :  { %v125_v34 = vadd.f32 1.0, %v952_v32 }
  0xf7   :  { %135 = vrot.lane.b32.xlu0 %v133_v30, %s1042_s3 }
  0xf8   :  { %953 = vrcp.f32 %v125_v34 }
 0x105   :  { %v954_v38 = vpop.eup %953 }
 0x169   :  { %v136_v36 = vpop.permute.xlu0 %135 }
 0x16a   :  { %v138_v37 = vadd.f32 %v136_v36, %v132_v35 }
 0x16c   :  { %955 = vtanh.f32 %v138_v37 }
 0x179   :  { %v956_v39 = vpop.eup %955 }
 0x17a   :  { %v140_v40 = vmul.f32 %v956_v39, %v954_v38  ;;  %v913_v39 = vld [vmem:[%s1387_s0 + $0x30] sm:$0xff] }
 0x17c   :  { %142 = vrot.lane.b32.xlu1 %v140_v40, %s1042_s3 }
 0x1ee   :  { %v143_v41 = vpop.permute.xlu1 %142 }
 0x1ef   :  { %145 = vst.msk [vmem:[%s1388_s2] sm:$0xff] %vm15_vm0, %v143_v41  ;;  %903 = vmatmul.mubr.msk.f32.vlgmr.msra.gmra.mxu1 %vm15_vm0, %v143_v41 }
 0x1f0   :  { %380 = vmatpush1.msra.mxu1 %v1066_v1  ;;  %427 = vmatprep.mubr.f32.mxu1 %v1041_v3 }
 0x1f1   :  { %381 = vmatprep.subr.mxu1 %v1071_v2 }
 0x1f2   :  { %382 = vmatpush1.msra.mxu1 %v1083_v4 }
 0x1f3   :  { %383 = vmatprep.subr.mxu1 %v1090_v5 }
 0x1f4   :  { %384 = vmatpush1.msra.mxu1 %v1097_v6 }
 0x1f5   :  { %385 = vmatprep.subr.mxu1 %v1104_v7 }
 0x1f6   :  { %386 = vmatpush1.msra.mxu1 %v1111_v8 }
 0x1f7   :  { %387 = vmatprep.subr.mxu1 %v1118_v9 }
 0x1f8   :  { %388 = vmatpush1.msra.mxu1 %v1125_v10 }
 0x1f9   :  { %389 = vmatprep.subr.mxu1 %v1132_v12 }
 0x1fa   :  { %390 = vmatpush1.msra.mxu1 %v1139_v13 }
 0x1fb   :  { %391 = vmatprep.subr.mxu1 %v1146_v14 }
 0x1fc   :  { %392 = vmatpush1.msra.mxu1 %v1153_v15 }
 0x1fd   :  { %393 = vmatprep.subr.mxu1 %v1160_v16 }
 0x1fe   :  { %394 = vmatpush1.msra.mxu1 %v1167_v17 }
 0x1ff   :  { %591 = vmatprep.subr.mxu1 %v1061_v0 }
 0x2af   :  { %v217_v43 = vpop.f32.mrf.mxu1 }
 0x2b0   :  { %v222_v44 = vadd.f32 %v901_v42, %v217_v43  ;;  %v914_v43 = vld [vmem:[%s1387_s0 + $0x38] sm:$0xff] }
 0x2b1   :  { %v219_v47 = vpop.f32.mrf.mxu1 }
 0x2b2   :  { %v904_v45 = vmul.f32 -1.442695, %v222_v44  ;;  %v223_v48 = vadd.f32 %v902_v46, %v219_v47 }
 0x2b4   :  { %957 = vpow2.f32 %v904_v45  ;;  %v905_v54 = vmul.f32 -1.442695, %v223_v48 }
 0x2b5   :  { %959 = vtanh.f32 %v223_v48 }
 0x2c1   :  { %v958_v49 = vpop.eup %957 }
 0x2c2   :  { %v227_v50 = vadd.f32 1.0, %v958_v49  ;;  %v960_v51 = vpop.eup %959 }
 0x2c4   :  { %961 = vrcp.f32 %v227_v50 }
 0x2c5   :  { %963 = vpow2.f32 %v905_v54 }
 0x2d1   :  { %v962_v52 = vpop.eup %961 }
 0x2d2   :  { %v238_v53 = vmul.f32 %v962_v52, %v960_v51  ;;  %v964_v55 = vpop.eup %963  ;;  %v237_v57 = vmul.f32 %v962_v52, %v138_v37 }
 0x2d3   :  { %v234_v56 = vadd.f32 1.0, %v964_v55 }
 0x2d4   :  { %240 = vrot.lane.b32.xlu1 %v238_v53, %s1042_s3 }
 0x2d5   :  { %965 = vrcp.f32 %v234_v56 }
 0x2e2   :  { %v966_v60 = vpop.eup %965 }
 0x346   :  { %v241_v58 = vpop.permute.xlu1 %240 }
 0x347   :  { %v243_v59 = vadd.f32 %v241_v58, %v237_v57 }
 0x349   :  { %967 = vtanh.f32 %v243_v59 }
 0x356   :  { %v968_v61 = vpop.eup %967 }
 0x357   :  { %v245_v62 = vmul.f32 %v968_v61, %v966_v60  ;;  %v919_v60 = vld [vmem:[%s1387_s0 + $0x40] sm:$0xff] }
 0x359   :  { %247 = vrot.lane.b32.xlu0 %v245_v62, %s1042_s3 }
 0x3cb   :  { %v248_v63 = vpop.permute.xlu0 %247 }
 0x3cc   :  { %906 = vst.msk [vmem:[%s1388_s2 + $0x8] sm:$0xff] %vm15_vm0, %v248_v63  ;;  %909 = vmatmul.mubr.msk.f32.vlgmr.msra.gmra.mxu0 %vm15_vm0, %v248_v63 }
 0x3cd   :  { %486 = vmatpush1.msra.mxu0 %v1066_v1  ;;  %533 = vmatprep.mubr.f32.mxu0 %v1041_v3 }
 0x3ce   :  { %487 = vmatprep.subr.mxu0 %v1071_v2 }
 0x3cf   :  { %488 = vmatpush1.msra.mxu0 %v1083_v4 }
 0x3d0   :  { %489 = vmatprep.subr.mxu0 %v1090_v5 }
 0x3d1   :  { %490 = vmatpush1.msra.mxu0 %v1097_v6 }
 0x3d2   :  { %491 = vmatprep.subr.mxu0 %v1104_v7 }
 0x3d3   :  { %492 = vmatpush1.msra.mxu0 %v1111_v8 }
 0x3d4   :  { %493 = vmatprep.subr.mxu0 %v1118_v9 }
 0x3d5   :  { %494 = vmatpush1.msra.mxu0 %v1125_v10 }
 0x3d6   :  { %495 = vmatprep.subr.mxu0 %v1132_v12 }
 0x3d7   :  { %496 = vmatpush1.msra.mxu0 %v1139_v13 }
 0x3d8   :  { %497 = vmatprep.subr.mxu0 %v1146_v14 }
 0x3d9   :  { %498 = vmatpush1.msra.mxu0 %v1153_v15 }
 0x3da   :  { %499 = vmatprep.subr.mxu0 %v1160_v16 }
 0x3db   :  { %500 = vmatpush1.msra.mxu0 %v1167_v17 }
 0x3dc   :  { %697 = vmatprep.subr.mxu0 %v1061_v0 }
 0x48c   :  { %v323_v18 = vpop.f32.mrf.mxu0 }
 0x48d   :  { %v328_v19 = vadd.f32 %v907_v11, %v323_v18  ;;  %v920_v11 = vld [vmem:[%s1387_s0 + $0x48] sm:$0xff] }
 0x48e   :  { %v325_v22 = vpop.f32.mrf.mxu0 }
 0x48f   :  { %v910_v20 = vmul.f32 -1.442695, %v328_v19  ;;  %v329_v23 = vadd.f32 %v908_v21, %v325_v22 }
 0x491   :  { %969 = vpow2.f32 %v910_v20  ;;  %v911_v29 = vmul.f32 -1.442695, %v329_v23 }
 0x492   :  { %971 = vtanh.f32 %v329_v23 }
 0x49e   :  { %v970_v24 = vpop.eup %969 }
 0x49f   :  { %v333_v25 = vadd.f32 1.0, %v970_v24  ;;  %v972_v26 = vpop.eup %971 }
 0x4a1   :  { %973 = vrcp.f32 %v333_v25 }
 0x4a2   :  { %975 = vpow2.f32 %v911_v29 }
 0x4ae   :  { %v974_v27 = vpop.eup %973 }
 0x4af   :  { %v344_v28 = vmul.f32 %v974_v27, %v972_v26  ;;  %v976_v30 = vpop.eup %975  ;;  %v343_v32 = vmul.f32 %v974_v27, %v243_v59 }
 0x4b0   :  { %v340_v31 = vadd.f32 1.0, %v976_v30 }
 0x4b1   :  { %346 = vrot.lane.b32.xlu1 %v344_v28, %s1042_s3 }
 0x4b2   :  { %977 = vrcp.f32 %v340_v31 }
 0x4bf   :  { %v978_v35 = vpop.eup %977 }
 0x523   :  { %v347_v33 = vpop.permute.xlu1 %346 }
 0x524   :  { %v349_v34 = vadd.f32 %v347_v33, %v343_v32 }
 0x526   :  { %979 = vtanh.f32 %v349_v34 }
 0x533   :  { %v980_v36 = vpop.eup %979 }
 0x534   :  { %v351_v37 = vmul.f32 %v980_v36, %v978_v35 }
 0x536   :  { %353 = vrot.lane.b32.xlu0 %v351_v37, %s1042_s3 }
 0x5a8   :  { %v354_v38 = vpop.permute.xlu0 %353 }
 0x5a9   :  { %912 = vst.msk [vmem:[%s1388_s2 + $0x10] sm:$0xff] %vm15_vm0, %v354_v38  ;;  %915 = vmatmul.mubr.msk.f32.vlgmr.msra.gmra.mxu1 %vm15_vm0, %v354_v38 }
 0x5aa   :  { %592 = vmatpush1.msra.mxu1 %v1066_v1  ;;  %639 = vmatprep.mubr.f32.mxu1 %v1041_v3 }
 0x5ab   :  { %593 = vmatprep.subr.mxu1 %v1071_v2 }
 0x5ac   :  { %594 = vmatpush1.msra.mxu1 %v1083_v4 }
 0x5ad   :  { %595 = vmatprep.subr.mxu1 %v1090_v5 }
 0x5ae   :  { %596 = vmatpush1.msra.mxu1 %v1097_v6 }
 0x5af   :  { %597 = vmatprep.subr.mxu1 %v1104_v7 }
 0x5b0   :  { %598 = vmatpush1.msra.mxu1 %v1111_v8 }
 0x5b1   :  { %599 = vmatprep.subr.mxu1 %v1118_v9 }
 0x5b2   :  { %600 = vmatpush1.msra.mxu1 %v1125_v10 }
 0x5b3   :  { %601 = vmatprep.subr.mxu1 %v1132_v12 }
 0x5b4   :  { %602 = vmatpush1.msra.mxu1 %v1139_v13 }
 0x5b5   :  { %603 = vmatprep.subr.mxu1 %v1146_v14 }
 0x5b6   :  { %604 = vmatpush1.msra.mxu1 %v1153_v15 }
 0x5b7   :  { %605 = vmatprep.subr.mxu1 %v1160_v16 }
 0x5b8   :  { %606 = vmatpush1.msra.mxu1 %v1167_v17 }
 0x5b9   :  { %803 = vmatprep.subr.mxu1 %v1061_v0 }
 0x669   :  { %v429_v40 = vpop.f32.mrf.mxu1 }
 0x66a   :  { %v434_v41 = vadd.f32 %v913_v39, %v429_v40 }
 0x66b   :  { %v431_v44 = vpop.f32.mrf.mxu1 }
 0x66c   :  { %v916_v42 = vmul.f32 -1.442695, %v434_v41  ;;  %v435_v45 = vadd.f32 %v914_v43, %v431_v44  ;;  %v931_v41 = vld [vmem:[%s1387_s0 + $0x60] sm:$0xff] }
 0x66e   :  { %981 = vpow2.f32 %v916_v42  ;;  %v917_v50 = vmul.f32 -1.442695, %v435_v45 }
 0x66f   :  { %983 = vtanh.f32 %v435_v45  ;;  %v932_v45 = vld [vmem:[%s1387_s0 + $0x68] sm:$0xff] }
 0x67b   :  { %v982_v46 = vpop.eup %981 }
 0x67c   :  { %v439_v47 = vadd.f32 1.0, %v982_v46  ;;  %v984_v48 = vpop.eup %983 }
 0x67e   :  { %985 = vrcp.f32 %v439_v47 }
 0x67f   :  { %987 = vpow2.f32 %v917_v50 }
 0x68b   :  { %v986_v0 = vpop.eup %985 }
 0x68c   :  { %v450_v49 = vmul.f32 %v986_v0, %v984_v48  ;;  %v988_v51 = vpop.eup %987  ;;  %v449_v53 = vmul.f32 %v986_v0, %v349_v34 }
 0x68d   :  { %v446_v52 = vadd.f32 1.0, %v988_v51 }
 0x68e   :  { %452 = vrot.lane.b32.xlu1 %v450_v49, %s1042_s3 }
 0x68f   :  { %989 = vrcp.f32 %v446_v52 }
 0x69c   :  { %v990_v56 = vpop.eup %989 }
 0x700   :  { %v453_v54 = vpop.permute.xlu1 %452 }
 0x701   :  { %v455_v55 = vadd.f32 %v453_v54, %v449_v53 }
 0x703   :  { %991 = vtanh.f32 %v455_v55 }
 0x710   :  { %v992_v57 = vpop.eup %991 }
 0x711   :  { %v457_v58 = vmul.f32 %v992_v57, %v990_v56 }
 0x713   :  { %459 = vrot.lane.b32.xlu0 %v457_v58, %s1042_s3 }
 0x785   :  { %v460_v59 = vpop.permute.xlu0 %459 }
 0x786   :  { %918 = vst.msk [vmem:[%s1388_s2 + $0x18] sm:$0xff] %vm15_vm0, %v460_v59  ;;  %921 = vmatmul.mubr.msk.f32.vlgmr.msra.gmra.mxu0 %vm15_vm0, %v460_v59 }
 0x787   :  { %698 = vmatpush1.msra.mxu0 %v1066_v1  ;;  %745 = vmatprep.mubr.f32.mxu0 %v1041_v3 }
 0x788   :  { %699 = vmatprep.subr.mxu0 %v1071_v2 }
 0x789   :  { %700 = vmatpush1.msra.mxu0 %v1083_v4 }
 0x78a   :  { %701 = vmatprep.subr.mxu0 %v1090_v5 }
 0x78b   :  { %702 = vmatpush1.msra.mxu0 %v1097_v6 }
 0x78c   :  { %703 = vmatprep.subr.mxu0 %v1104_v7 }
 0x78d   :  { %704 = vmatpush1.msra.mxu0 %v1111_v8 }
 0x78e   :  { %705 = vmatprep.subr.mxu0 %v1118_v9 }
 0x78f   :  { %706 = vmatpush1.msra.mxu0 %v1125_v10 }
 0x790   :  { %707 = vmatprep.subr.mxu0 %v1132_v12 }
 0x791   :  { %708 = vmatpush1.msra.mxu0 %v1139_v13 }
 0x792   :  { %709 = vmatprep.subr.mxu0 %v1146_v14 }
 0x793   :  { %710 = vmatpush1.msra.mxu0 %v1153_v15 }
 0x794   :  { %711 = vmatprep.subr.mxu0 %v1160_v16 }
 0x795   :  { %712 = vmatpush1.msra.mxu0 %v1167_v17 }
 0x846   :  { %v535_v61 = vpop.f32.mrf.mxu0 }
 0x847   :  { %v540_v62 = vadd.f32 %v919_v60, %v535_v61 }
 0x848   :  { %v537_v18 = vpop.f32.mrf.mxu0 }
 0x849   :  { %v922_v63 = vmul.f32 -1.442695, %v540_v62  ;;  %v541_v19 = vadd.f32 %v920_v11, %v537_v18  ;;  %v937_v62 = vld [vmem:[%s1387_s0 + $0x70] sm:$0xff] }
 0x84b   :  { %993 = vpow2.f32 %v922_v63  ;;  %v923_v25 = vmul.f32 -1.442695, %v541_v19 }
 0x84c   :  { %995 = vtanh.f32 %v541_v19  ;;  %v938_v19 = vld [vmem:[%s1387_s0 + $0x78] sm:$0xff] }
 0x858   :  { %v994_v20 = vpop.eup %993 }
 0x859   :  { %v545_v21 = vadd.f32 1.0, %v994_v20  ;;  %v996_v22 = vpop.eup %995 }
 0x85b   :  { %997 = vrcp.f32 %v545_v21 }
 0x85c   :  { %999 = vpow2.f32 %v923_v25 }
 0x868   :  { %v998_v23 = vpop.eup %997 }
 0x869   :  { %v556_v24 = vmul.f32 %v998_v23, %v996_v22  ;;  %v1000_v26 = vpop.eup %999  ;;  %v555_v28 = vmul.f32 %v998_v23, %v455_v55 }
 0x86a   :  { %v552_v27 = vadd.f32 1.0, %v1000_v26 }
 0x86b   :  { %558 = vrot.lane.b32.xlu1 %v556_v24, %s1042_s3 }
 0x86c   :  { %1001 = vrcp.f32 %v552_v27 }
 0x879   :  { %v1002_v31 = vpop.eup %1001 }
 0x8dd   :  { %v559_v29 = vpop.permute.xlu1 %558 }
 0x8de   :  { %v561_v30 = vadd.f32 %v559_v29, %v555_v28 }
 0x8e0   :  { %1003 = vtanh.f32 %v561_v30 }
 0x8ed   :  { %v1004_v32 = vpop.eup %1003 }
 0x8ee   :  { %v563_v33 = vmul.f32 %v1004_v32, %v1002_v31 }
 0x8f0   :  { %565 = vrot.lane.b32.xlu0 %v563_v33, %s1042_s3 }
 0x962   :  { %v566_v34 = vpop.permute.xlu0 %565 }
 0x963   :  { %924 = vst.msk [vmem:[%s1388_s2 + $0x20] sm:$0xff] %vm15_vm0, %v566_v34  ;;  %927 = vmatmul.mubr.msk.f32.vlgmr.msra.gmra.mxu1 %vm15_vm0, %v566_v34 }
 0x964   :  { %804 = vmatpush1.msra.mxu1 %v1066_v1  ;;  %851 = vmatprep.mubr.f32.mxu1 %v1041_v3  ;;  %v925_v1 = vld [vmem:[%s1387_s0 + $0x50] sm:$0xff] }
 0x965   :  { %805 = vmatprep.subr.mxu1 %v1071_v2 }
 0x966   :  { %806 = vmatpush1.msra.mxu1 %v1083_v4 }
 0x967   :  { %807 = vmatprep.subr.mxu1 %v1090_v5  ;;  %v926_v5 = vld [vmem:[%s1387_s0 + $0x58] sm:$0xff] }
 0x968   :  { %808 = vmatpush1.msra.mxu1 %v1097_v6 }
 0x969   :  { %809 = vmatprep.subr.mxu1 %v1104_v7 }
 0x96a   :  { %810 = vmatpush1.msra.mxu1 %v1111_v8 }
 0x96b   :  { %811 = vmatprep.subr.mxu1 %v1118_v9 }
 0x96c   :  { %812 = vmatpush1.msra.mxu1 %v1125_v10 }
 0x96d   :  { %813 = vmatprep.subr.mxu1 %v1132_v12 }
 0x96e   :  { %814 = vmatpush1.msra.mxu1 %v1139_v13 }
 0x96f   :  { %815 = vmatprep.subr.mxu1 %v1146_v14 }
 0x970   :  { %816 = vmatpush1.msra.mxu1 %v1153_v15 }
 0x971   :  { %817 = vmatprep.subr.mxu1 %v1160_v16 }
 0x972   :  { %818 = vmatpush1.msra.mxu1 %v1167_v17 }
 0xa23   :  { %v641_v2 = vpop.f32.mrf.mxu1 }
 0xa24   :  { %v646_v3 = vadd.f32 %v925_v1, %v641_v2 }
 0xa25   :  { %v643_v6 = vpop.f32.mrf.mxu1 }
 0xa26   :  { %v928_v4 = vmul.f32 -1.442695, %v646_v3  ;;  %v647_v7 = vadd.f32 %v926_v5, %v643_v6 }
 0xa28   :  { %1005 = vpow2.f32 %v928_v4  ;;  %v929_v14 = vmul.f32 -1.442695, %v647_v7 }
 0xa29   :  { %1007 = vtanh.f32 %v647_v7 }
 0xa35   :  { %v1006_v8 = vpop.eup %1005 }
 0xa36   :  { %v651_v9 = vadd.f32 1.0, %v1006_v8  ;;  %v1008_v10 = vpop.eup %1007 }
 0xa38   :  { %1009 = vrcp.f32 %v651_v9 }
 0xa39   :  { %1011 = vpow2.f32 %v929_v14 }
 0xa45   :  { %v1010_v12 = vpop.eup %1009 }
 0xa46   :  { %v662_v13 = vmul.f32 %v1010_v12, %v1008_v10  ;;  %v1012_v15 = vpop.eup %1011  ;;  %v661_v17 = vmul.f32 %v1010_v12, %v561_v30 }
 0xa47   :  { %v658_v16 = vadd.f32 1.0, %v1012_v15 }
 0xa48   :  { %664 = vrot.lane.b32.xlu1 %v662_v13, %s1042_s3 }
 0xa49   :  { %1013 = vrcp.f32 %v658_v16 }
 0xa56   :  { %v1014_v37 = vpop.eup %1013 }
 0xaba   :  { %v665_v35 = vpop.permute.xlu1 %664 }
 0xabb   :  { %v667_v36 = vadd.f32 %v665_v35, %v661_v17 }
 0xabd   :  { %1015 = vtanh.f32 %v667_v36 }
 0xaca   :  { %v1016_v38 = vpop.eup %1015 }
 0xacb   :  { %v669_v39 = vmul.f32 %v1016_v38, %v1014_v37 }
 0xacd   :  { %671 = vrot.lane.b32.xlu0 %v669_v39, %s1042_s3 }
 0xb3f   :  { %v672_v40 = vpop.permute.xlu0 %671 }
 0xb40   :  { %930 = vst.msk [vmem:[%s1388_s2 + $0x28] sm:$0xff] %vm15_vm0, %v672_v40  ;;  %933 = vmatmul.mubr.msk.f32.vlgmr.msra.gmra.mxu0 %vm15_vm0, %v672_v40 }
 0xc00   :  { %v747_v42 = vpop.f32.mrf.mxu0 }
 0xc01   :  { %v752_v43 = vadd.f32 %v931_v41, %v747_v42 }
 0xc02   :  { %v749_v46 = vpop.f32.mrf.mxu0 }
 0xc03   :  { %v934_v44 = vmul.f32 -1.442695, %v752_v43  ;;  %v753_v47 = vadd.f32 %v932_v45, %v749_v46 }
 0xc05   :  { %1017 = vpow2.f32 %v934_v44  ;;  %v935_v52 = vmul.f32 -1.442695, %v753_v47 }
 0xc06   :  { %1019 = vtanh.f32 %v753_v47 }
 0xc12   :  { %v1018_v48 = vpop.eup %1017 }
 0xc13   :  { %v757_v0 = vadd.f32 1.0, %v1018_v48  ;;  %v1020_v49 = vpop.eup %1019 }
 0xc15   :  { %1021 = vrcp.f32 %v757_v0 }
 0xc16   :  { %1023 = vpow2.f32 %v935_v52 }
 0xc22   :  { %v1022_v50 = vpop.eup %1021 }
 0xc23   :  { %v768_v51 = vmul.f32 %v1022_v50, %v1020_v49  ;;  %v1024_v53 = vpop.eup %1023  ;;  %v767_v55 = vmul.f32 %v1022_v50, %v667_v36 }
 0xc24   :  { %v764_v54 = vadd.f32 1.0, %v1024_v53 }
 0xc25   :  { %770 = vrot.lane.b32.xlu1 %v768_v51, %s1042_s3 }
 0xc26   :  { %1025 = vrcp.f32 %v764_v54 }
 0xc33   :  { %v1026_v58 = vpop.eup %1025 }
 0xc97   :  { %v771_v56 = vpop.permute.xlu1 %770 }
 0xc98   :  { %v773_v57 = vadd.f32 %v771_v56, %v767_v55 }
 0xc9a   :  { %1027 = vtanh.f32 %v773_v57 }
 0xca7   :  { %v1028_v59 = vpop.eup %1027 }
 0xca8   :  { %v775_v60 = vmul.f32 %v1028_v59, %v1026_v58 }
 0xcaa   :  { %777 = vrot.lane.b32.xlu0 %v775_v60, %s1042_s3 }
 0xd1c   :  { %v778_v61 = vpop.permute.xlu0 %777 }
 0xd1d   :  { %936 = vst.msk [vmem:[%s1388_s2 + $0x30] sm:$0xff] %vm15_vm0, %v778_v61  ;;  %939 = vmatmul.mubr.msk.f32.vlgmr.msra.gmra.mxu1 %vm15_vm0, %v778_v61 }
 0xddd   :  { %v853_v63 = vpop.f32.mrf.mxu1 }
 0xdde   :  { %v858_v11 = vadd.f32 %v937_v62, %v853_v63 }
 0xddf   :  { %v855_v20 = vpop.f32.mrf.mxu1 }
 0xde0   :  { %v940_v18 = vmul.f32 -1.442695, %v858_v11  ;;  %v859_v21 = vadd.f32 %v938_v19, %v855_v20 }
 0xde2   :  { %1029 = vpow2.f32 %v940_v18  ;;  %v941_v27 = vmul.f32 -1.442695, %v859_v21 }
 0xde3   :  { %1031 = vtanh.f32 %v859_v21 }
 0xdef   :  { %v1030_v22 = vpop.eup %1029 }
 0xdf0   :  { %v863_v23 = vadd.f32 1.0, %v1030_v22  ;;  %v1032_v24 = vpop.eup %1031 }
 0xdf2   :  { %1033 = vrcp.f32 %v863_v23 }
 0xdf3   :  { %1035 = vpow2.f32 %v941_v27 }
 0xdff   :  { %v1034_v25 = vpop.eup %1033 }
 0xe00   :  { %v874_v26 = vmul.f32 %v1034_v25, %v1032_v24  ;;  %v1036_v28 = vpop.eup %1035  ;;  %v873_v30 = vmul.f32 %v1034_v25, %v773_v57 }
 0xe01   :  { %v870_v29 = vadd.f32 1.0, %v1036_v28 }
 0xe02   :  { %876 = vrot.lane.b32.xlu1 %v874_v26, %s1042_s3 }
 0xe03   :  { %1037 = vrcp.f32 %v870_v29 }
 0xe10   :  { %v1038_v33 = vpop.eup %1037 }
 0xe74   :  { %v877_v31 = vpop.permute.xlu1 %876 }
 0xe75   :  { %v879_v32 = vadd.f32 %v877_v31, %v873_v30 }
 0xe77   :  { %1039 = vtanh.f32 %v879_v32  ;;  %890 = vrot.lane.b32.xlu1 %v879_v32, %s1042_s3 }
 0xe84   :  { %v1040_v34 = vpop.eup %1039 }
 0xe85   :  { %v881_v1 = vmul.f32 %v1040_v34, %v1038_v33 }
 0xe87   :  { %883 = vrot.lane.b32.xlu0 %v881_v1, %s1042_s3 }
 0xee9   :  { %v891_v2 = vpop.permute.xlu1 %890 }
 0xeea   :  { %893 = vst.msk [vmem:[#allocation3] sm:$0xff] %vm15_vm0, %v891_v2 }
 0xef9   :  { %v884_v3 = vpop.permute.xlu0 %883 }
 0xefa   :  { %942 = vst.msk [vmem:[%s1388_s2 + $0x38] sm:$0xff] %vm15_vm0, %v884_v3  ;;  %888 = vst.msk [vmem:[#allocation2] sm:$0xff] %vm15_vm0, %v884_v3 }

// kernel: dec_categorical_lstm_policy_forward.5
= control target key start
LH: loop header
LB: loop body
LE: loop exit
PB: predicated region body
PF: predicated region fallthrough
CT: control target
= control target key end

     0   :  { %vm40_vm0 = vcmask 523264   ;;  %vm170_vm1 = vcmask 39936   ;;  %s612_s2 = inlined_call_operand.vmem [shape: f32[64,5], index: 2, kind: input, shape index: {}]   ;;  %s613_s0 = inlined_call_operand.vmem [shape: f32[8,8,64], index: 0, kind: input, shape index: {}]   ;;  %s614_s3 = inlined_call_operand.vmem [shape: f32[1,5], index: 3, kind: input, shape index: {}]   ;;  %s615_s1 = inlined_call_operand.vmem [shape: f32[8,8,5], index: 1, kind: input, shape index: {}]   ;;  %s616_s4 = inlined_call_operand.vmem [shape: f32[8,8,5], index: 4, kind: output, shape index: {}]  }
   0x1   :  { %v32_v0 = vld [vmem:[%s612_s2 + $0x38] sm:$0xff]  ;;  %v31_v1 = vld [vmem:[%s612_s2 + $0x30] sm:$0xff]  ;;  %v30_v2 = vld [vmem:[%s612_s2 + $0x28] sm:$0xff] }
   0x2   :  { %352 = vmatprep.subr.mxu0 %v32_v0  ;;  %380 = vmatprep.subr.mxu1 %v32_v0  ;;  %v29_v3 = vld [vmem:[%s612_s2 + $0x20] sm:$0xff]  ;;  %v28_v4 = vld [vmem:[%s612_s2 + $0x18] sm:$0xff]  ;;  %v27_v5 = vld [vmem:[%s612_s2 + $0x10] sm:$0xff] }
   0x3   :  { %353 = vmatpush3.msra.mxu0 %v32_v0  ;;  %388 = vmatpush3.msra.mxu1 %v32_v0  ;;  %v26_v6 = vld [vmem:[%s612_s2 + $0x8] sm:$0xff]  ;;  %v25_v7 = vld [vmem:[%s612_s2] sm:$0xff]  ;;  %v19_v12 = vld [vmem:[%s613_s0 + $0x10] sm:$0xff] }
   0x4   :  { %354 = vmatprep.subr.mxu0 %v31_v1  ;;  %381 = vmatprep.subr.mxu1 %v31_v1  ;;  %v17_v8 = vld [vmem:[%s613_s0] sm:$0xff]  ;;  %v18_v10 = vld [vmem:[%s613_s0 + $0x8] sm:$0xff]  ;;  %v23_v13 = vld [vmem:[%s613_s0 + $0x30] sm:$0xff] }
   0x5   :  { %355 = vmatpush3.msra.mxu0 %v31_v1  ;;  %389 = vmatpush3.msra.mxu1 %v31_v1  ;;  %v21_v9 = vld [vmem:[%s613_s0 + $0x20] sm:$0xff]  ;;  %v22_v11 = vld [vmem:[%s613_s0 + $0x28] sm:$0xff]  ;;  %v20_v14 = vld [vmem:[%s613_s0 + $0x18] sm:$0xff] }
   0x6   :  { %356 = vmatprep.subr.mxu0 %v30_v2  ;;  %382 = vmatprep.subr.mxu1 %v30_v2  ;;  %v24_v15 = vld [vmem:[%s613_s0 + $0x38] sm:$0xff]  ;;  %v327_v16 = vld [vmem:[%s614_s3] ss:$0 sm:$0xff] }
   0x7   :  { %357 = vmatpush3.msra.mxu0 %v30_v2  ;;  %390 = vmatpush3.msra.mxu1 %v30_v2 }
   0x8   :  { %358 = vmatprep.subr.mxu0 %v29_v3  ;;  %383 = vmatprep.subr.mxu1 %v29_v3 }
   0x9   :  { %359 = vmatpush3.msra.mxu0 %v29_v3  ;;  %391 = vmatpush3.msra.mxu1 %v29_v3 }
   0xa   :  { %360 = vmatprep.subr.mxu0 %v28_v4  ;;  %384 = vmatprep.subr.mxu1 %v28_v4 }
   0xb   :  { %361 = vmatpush3.msra.mxu0 %v28_v4  ;;  %392 = vmatpush3.msra.mxu1 %v28_v4 }
   0xc   :  { %362 = vmatprep.subr.mxu0 %v27_v5  ;;  %385 = vmatprep.subr.mxu1 %v27_v5 }
   0xd   :  { %363 = vmatpush3.msra.mxu0 %v27_v5  ;;  %393 = vmatpush3.msra.mxu1 %v27_v5 }
   0xe   :  { %364 = vmatprep.subr.mxu0 %v26_v6  ;;  %386 = vmatprep.subr.mxu1 %v26_v6 }
   0xf   :  { %365 = vmatpush3.msra.mxu0 %v26_v6  ;;  %394 = vmatpush3.msra.mxu1 %v26_v6 }
  0x10   :  { %366 = vmatprep.subr.mxu0 %v25_v7  ;;  %387 = vmatprep.subr.mxu1 %v25_v7 }
  0x11   :  { %367 = vmatpush3.msra.mxu0 %v25_v7  ;;  %395 = vmatpush3.msra.mxu1 %v25_v7 }
  0x12   :  { %368 = vmatprep.mubr.msk.f32.mxu0 %vm40_vm0, %v17_v8  ;;  %374 = vmatprep.mubr.msk.f32.mxu1 %vm40_vm0, %v21_v9 }
  0x13   :  { %369 = vmatmul.mubr.msk.f32.vlgmr.msra.gmra.mxu0 %vm40_vm0, %v18_v10  ;;  %375 = vmatmul.mubr.msk.f32.vlgmr.msra.gmra.mxu1 %vm40_vm0, %v22_v11 }
  0x14   :  { %371 = vmatprep.mubr.msk.f32.mxu0 %vm40_vm0, %v19_v12  ;;  %377 = vmatprep.mubr.msk.f32.mxu1 %vm40_vm0, %v23_v13 }
  0x17   :  { %372 = vmatmul.mubr.msk.f32.gmra.mxu0 %vm40_vm0, %v20_v14  ;;  %378 = vmatmul.mubr.msk.f32.gmra.mxu1 %vm40_vm0, %v24_v15 }
  0xd3   :  { %v370_v17 = vpop.f32.mrf.mxu0  ;;  %v376_v18 = vpop.f32.mrf.mxu1 }
  0xd4   :  { %v137_v19 = vadd.f32 %v370_v17, %v327_v16  ;;  %v157_v20 = vadd.f32 %v376_v18, %v327_v16 }
  0xd5   :  { %v131_v21 = vpop.f32.mrf.mxu0  ;;  %v151_v22 = vpop.f32.mrf.mxu1 }
  0xd6   :  { %v132_v23 = vadd.f32 %v327_v16, %v131_v21  ;;  %v186_v24 = vsel %vm170_vm1, %v157_v20, -inf  ;;  %v174_v25 = vsel %vm170_vm1, %v137_v19, -inf  ;;  %v152_v31 = vadd.f32 %v327_v16, %v151_v22 }
  0xd7   :  { %187 = vmax.xlane.f32.xlu1 %v186_v24  ;;  %175 = vmax.xlane.f32.xlu0 %v174_v25  ;;  %v373_v26 = vpop.f32.mrf.mxu0  ;;  %v379_v27 = vpop.f32.mrf.mxu1  ;;  %v260_v25 = vld [vmem:[%s615_s1 + $0x8] sm:$0xff] }
  0xd8   :  { %v147_v28 = vadd.f32 %v373_v26, %v327_v16  ;;  %v171_v34 = vsel %vm170_vm1, %v132_v23, -inf  ;;  %v167_v35 = vadd.f32 %v379_v27, %v327_v16  ;;  %v183_v38 = vsel %vm170_vm1, %v152_v31, -inf }
  0xd9   :  { %v141_v29 = vpop.f32.mrf.mxu0  ;;  %v161_v30 = vpop.f32.mrf.mxu1 }
  0xda   :  { %v180_v32 = vsel %vm170_vm1, %v147_v28, -inf  ;;  %v142_v33 = vadd.f32 %v327_v16, %v141_v29  ;;  %v162_v36 = vadd.f32 %v327_v16, %v161_v30  ;;  %v192_v39 = vsel %vm170_vm1, %v167_v35, -inf  ;;  %v264_v30 = vld [vmem:[%s615_s1 + $0x28] sm:$0xff] }
  0xdb   :  { %181 = vmax.xlane.f32.xlu1 %v180_v32  ;;  %172 = vmax.xlane.f32.xlu0 %v171_v34  ;;  %v259_v34 = vld [vmem:[%s615_s1] sm:$0xff] }
  0xdc   :  { %v177_v37 = vsel %vm170_vm1, %v142_v33, -inf  ;;  %v189_v40 = vsel %vm170_vm1, %v162_v36, -inf }
  0xdf   :  { %178 = vmax.xlane.f32.xlu1 %v177_v37  ;;  %184 = vmax.xlane.f32.xlu0 %v183_v38 }
  0xe3   :  { %193 = vmax.xlane.f32.xlu1 %v192_v39  ;;  %190 = vmax.xlane.f32.xlu0 %v189_v40  ;;  %v262_v39 = vld [vmem:[%s615_s1 + $0x18] sm:$0xff] }
 0x160   :  { %v188_v41 = vpop.xlane.xlu1 %187  ;;  %v176_v42 = vpop.xlane.xlu0 %175 }
 0x161   :  { %v200_v43 = vsub.f32 %v157_v20, %v188_v41  ;;  %v196_v44 = vsub.f32 %v137_v19, %v176_v42 }
 0x163   :  { %v205_v45 = vmul.f32 1.442695, %v196_v44  ;;  %v213_v46 = vmul.f32 1.442695, %v200_v43  ;;  %v263_v43 = vld [vmem:[%s615_s1 + $0x20] sm:$0xff] }
 0x164   :  { %v182_v47 = vpop.xlane.xlu1 %181  ;;  %v173_v48 = vpop.xlane.xlu0 %172 }
 0x165   :  { %v198_v49 = vsub.f32 %v147_v28, %v182_v47  ;;  %v195_v50 = vsub.f32 %v132_v23, %v173_v48  ;;  %396 = vpow2.f32 %v205_v45 }
 0x166   :  { %398 = vpow2.f32 %v213_v46 }
 0x167   :  { %v203_v51 = vmul.f32 1.442695, %v195_v50  ;;  %v209_v52 = vmul.f32 1.442695, %v198_v49  ;;  %v266_v49 = vld [vmem:[%s615_s1 + $0x38] sm:$0xff] }
 0x168   :  { %v179_v53 = vpop.xlane.xlu1 %178  ;;  %v185_v54 = vpop.xlane.xlu0 %184 }
 0x169   :  { %v197_v55 = vsub.f32 %v142_v33, %v179_v53  ;;  %v199_v56 = vsub.f32 %v152_v31, %v185_v54  ;;  %400 = vpow2.f32 %v203_v51  ;;  %v261_v53 = vld [vmem:[%s615_s1 + $0x10] sm:$0xff] }
 0x16a   :  { %402 = vpow2.f32 %v209_v52 }
 0x16b   :  { %v211_v57 = vmul.f32 1.442695, %v199_v56  ;;  %v207_v58 = vmul.f32 1.442695, %v197_v55 }
 0x16c   :  { %v194_v59 = vpop.xlane.xlu1 %193  ;;  %v191_v60 = vpop.xlane.xlu0 %190 }
 0x16d   :  { %v202_v61 = vsub.f32 %v167_v35, %v194_v59  ;;  %v201_v62 = vsub.f32 %v162_v36, %v191_v60  ;;  %404 = vpow2.f32 %v211_v57  ;;  %v265_v59 = vld [vmem:[%s615_s1 + $0x30] sm:$0xff] }
 0x16e   :  { %406 = vpow2.f32 %v207_v58 }
 0x16f   :  { %v217_v63 = vmul.f32 1.442695, %v202_v61  ;;  %v215_v0 = vmul.f32 1.442695, %v201_v62 }
 0x171   :  { %408 = vpow2.f32 %v217_v63 }
 0x172   :  { %v397_v1 = vpop.eup %396  ;;  %410 = vpow2.f32 %v215_v0 }
 0x173   :  { %v222_v2 = vsel %vm170_vm1, %v397_v1, 0.0  ;;  %v399_v3 = vpop.eup %398 }
 0x174   :  { %223 = vadd.xlane.f32.xlu1 %v222_v2  ;;  %v234_v5 = vsel %vm170_vm1, %v399_v3, 0.0 }
 0x176   :  { %v401_v4 = vpop.eup %400 }
 0x177   :  { %v219_v6 = vsel %vm170_vm1, %v401_v4, 0.0  ;;  %v403_v7 = vpop.eup %402 }
 0x178   :  { %235 = vadd.xlane.f32.xlu1 %v234_v5  ;;  %220 = vadd.xlane.f32.xlu0 %v219_v6  ;;  %v228_v9 = vsel %vm170_vm1, %v403_v7, 0.0 }
 0x17a   :  { %v405_v8 = vpop.eup %404 }
 0x17b   :  { %v231_v10 = vsel %vm170_vm1, %v405_v8, 0.0  ;;  %v407_v11 = vpop.eup %406 }
 0x17c   :  { %229 = vadd.xlane.f32.xlu1 %v228_v9  ;;  %232 = vadd.xlane.f32.xlu0 %v231_v10  ;;  %v225_v14 = vsel %vm170_vm1, %v407_v11, 0.0 }
 0x17e   :  { %v409_v12 = vpop.eup %408 }
 0x17f   :  { %v240_v13 = vsel %vm170_vm1, %v409_v12, 0.0  ;;  %v543_v15 = vpop.eup %410 }
 0x180   :  { %241 = vadd.xlane.f32.xlu1 %v240_v13  ;;  %226 = vadd.xlane.f32.xlu0 %v225_v14  ;;  %v237_v16 = vsel %vm170_vm1, %v543_v15, 0.0 }
 0x184   :  { %238 = vadd.xlane.f32.xlu0 %v237_v16 }
 0x1fd   :  { %v224_v17 = vpop.xlane.xlu1 %223 }
 0x1fe   :  { %412 = vrcp.f32 %v224_v17 }
 0x201   :  { %v236_v18 = vpop.xlane.xlu1 %235  ;;  %v221_v19 = vpop.xlane.xlu0 %220 }
 0x202   :  { %414 = vrcp.f32 %v236_v18 }
 0x203   :  { %416 = vrcp.f32 %v221_v19 }
 0x205   :  { %v230_v20 = vpop.xlane.xlu1 %229  ;;  %v233_v21 = vpop.xlane.xlu0 %232 }
 0x206   :  { %418 = vrcp.f32 %v230_v20 }
 0x207   :  { %420 = vrcp.f32 %v233_v21 }
 0x209   :  { %v242_v22 = vpop.xlane.xlu1 %241  ;;  %v227_v23 = vpop.xlane.xlu0 %226 }
 0x20a   :  { %422 = vrcp.f32 %v242_v22 }
 0x20b   :  { %v413_v24 = vpop.eup %412  ;;  %424 = vrcp.f32 %v227_v23 }
 0x20c   :  { %v252_v26 = vmul.f32 %v413_v24, %v397_v1 }
 0x20d   :  { %v239_v27 = vpop.xlane.xlu0 %238 }
 0x20e   :  { %426 = vrcp.f32 %v239_v27  ;;  %v268_v28 = vmul.f32 %v260_v25, %v252_v26 }
 0x20f   :  { %v415_v29 = vpop.eup %414 }
 0x210   :  { %v417_v31 = vpop.eup %416  ;;  %v278_v32 = vsel %vm170_vm1, %v268_v28, 0.0  ;;  %v256_v33 = vmul.f32 %v415_v29, %v399_v3 }
 0x211   :  { %279 = vadd.xlane.f32.xlu1 %v278_v32  ;;  %v251_v35 = vmul.f32 %v417_v31, %v401_v4 }
 0x212   :  { %v272_v36 = vmul.f32 %v264_v30, %v256_v33 }
 0x213   :  { %v419_v37 = vpop.eup %418  ;;  %v267_v38 = vmul.f32 %v259_v34, %v251_v35 }
 0x214   :  { %v421_v40 = vpop.eup %420  ;;  %v290_v41 = vsel %vm170_vm1, %v272_v36, 0.0  ;;  %v254_v42 = vmul.f32 %v419_v37, %v403_v7 }
 0x215   :  { %291 = vadd.xlane.f32.xlu1 %v290_v41  ;;  %v275_v44 = vsel %vm170_vm1, %v267_v38, 0.0  ;;  %v255_v45 = vmul.f32 %v421_v40, %v405_v8 }
 0x216   :  { %276 = vadd.xlane.f32.xlu0 %v275_v44  ;;  %v270_v46 = vmul.f32 %v262_v39, %v254_v42 }
 0x217   :  { %v423_v47 = vpop.eup %422  ;;  %v271_v48 = vmul.f32 %v263_v43, %v255_v45 }
 0x218   :  { %v425_v50 = vpop.eup %424  ;;  %v284_v51 = vsel %vm170_vm1, %v270_v46, 0.0  ;;  %v258_v52 = vmul.f32 %v423_v47, %v409_v12 }
 0x219   :  { %285 = vadd.xlane.f32.xlu1 %v284_v51  ;;  %v287_v54 = vsel %vm170_vm1, %v271_v48, 0.0  ;;  %v253_v55 = vmul.f32 %v425_v50, %v407_v11 }
 0x21a   :  { %288 = vadd.xlane.f32.xlu0 %v287_v54  ;;  %v274_v56 = vmul.f32 %v266_v49, %v258_v52 }
 0x21b   :  { %v427_v57 = vpop.eup %426  ;;  %v269_v58 = vmul.f32 %v261_v53, %v253_v55 }
 0x21c   :  { %v296_v60 = vsel %vm170_vm1, %v274_v56, 0.0  ;;  %v257_v61 = vmul.f32 %v427_v57, %v543_v15 }
 0x21d   :  { %297 = vadd.xlane.f32.xlu1 %v296_v60  ;;  %v281_v62 = vsel %vm170_vm1, %v269_v58, 0.0 }
 0x21e   :  { %282 = vadd.xlane.f32.xlu0 %v281_v62  ;;  %v273_v63 = vmul.f32 %v265_v59, %v257_v61 }
 0x220   :  { %v293_v0 = vsel %vm170_vm1, %v273_v63, 0.0 }
 0x222   :  { %294 = vadd.xlane.f32.xlu0 %v293_v0 }
 0x29a   :  { %v280_v1 = vpop.xlane.xlu1 %279 }
 0x29b   :  { %428 = vrcp.f32 %v280_v1 }
 0x29e   :  { %v292_v2 = vpop.xlane.xlu1 %291 }
 0x29f   :  { %430 = vrcp.f32 %v292_v2  ;;  %v277_v3 = vpop.xlane.xlu0 %276 }
 0x2a0   :  { %432 = vrcp.f32 %v277_v3 }
 0x2a2   :  { %v286_v4 = vpop.xlane.xlu1 %285 }
 0x2a3   :  { %434 = vrcp.f32 %v286_v4  ;;  %v289_v5 = vpop.xlane.xlu0 %288 }
 0x2a4   :  { %436 = vrcp.f32 %v289_v5 }
 0x2a6   :  { %v298_v6 = vpop.xlane.xlu1 %297 }
 0x2a7   :  { %438 = vrcp.f32 %v298_v6  ;;  %v283_v7 = vpop.xlane.xlu0 %282 }
 0x2a8   :  { %v429_v8 = vpop.eup %428  ;;  %440 = vrcp.f32 %v283_v7 }
 0x2a9   :  { %v308_v9 = vmul.f32 %v429_v8, %v268_v28 }
 0x2ab   :  { %316 = vst.msk [vmem:[%s616_s4 + $0x8] sm:$0xff] %vm170_vm1, %v308_v9  ;;  %v295_v10 = vpop.xlane.xlu0 %294 }
 0x2ac   :  { %v431_v11 = vpop.eup %430  ;;  %442 = vrcp.f32 %v295_v10 }
 0x2ad   :  { %v433_v12 = vpop.eup %432  ;;  %v312_v13 = vmul.f32 %v431_v11, %v272_v36 }
 0x2ae   :  { %v307_v14 = vmul.f32 %v433_v12, %v267_v38 }
 0x2af   :  { %320 = vst.msk [vmem:[%s616_s4 + $0x28] sm:$0xff] %vm170_vm1, %v312_v13 }
 0x2b0   :  { %v435_v15 = vpop.eup %434  ;;  %315 = vst.msk [vmem:[%s616_s4] sm:$0xff] %vm170_vm1, %v307_v14 }
 0x2b1   :  { %v437_v16 = vpop.eup %436  ;;  %v310_v17 = vmul.f32 %v435_v15, %v270_v46 }
 0x2b2   :  { %v311_v18 = vmul.f32 %v437_v16, %v271_v48 }
 0x2b3   :  { %318 = vst.msk [vmem:[%s616_s4 + $0x18] sm:$0xff] %vm170_vm1, %v310_v17 }
 0x2b4   :  { %v439_v19 = vpop.eup %438  ;;  %319 = vst.msk [vmem:[%s616_s4 + $0x20] sm:$0xff] %vm170_vm1, %v311_v18 }
 0x2b5   :  { %v441_v20 = vpop.eup %440  ;;  %v314_v21 = vmul.f32 %v439_v19, %v274_v56 }
 0x2b6   :  { %v309_v22 = vmul.f32 %v441_v20, %v269_v58 }
 0x2b7   :  { %322 = vst.msk [vmem:[%s616_s4 + $0x38] sm:$0xff] %vm170_vm1, %v314_v21 }
 0x2b8   :  { %317 = vst.msk [vmem:[%s616_s4 + $0x10] sm:$0xff] %vm170_vm1, %v309_v22 }
 0x2b9   :  { %v443_v23 = vpop.eup %442 }
 0x2ba   :  { %v313_v24 = vmul.f32 %v443_v23, %v273_v63 }
 0x2bc   :  { %321 = vst.msk [vmem:[%s616_s4 + $0x30] sm:$0xff] %vm170_vm1, %v313_v24 }

// kernel: dec_categorical_lstm_policy_forward.3
= control target key start
LH: loop header
LB: loop body
LE: loop exit
PB: predicated region body
PF: predicated region fallthrough
CT: control target
= control target key end

     0   :  { %vm74_vm0 = vcmask 1041408   ;;  %vm49_vm1 = vcmask 80896   ;;  %vm206_vm2 = vcmask 523264   ;;  %s1125_s1 = inlined_call_operand.vmem [shape: f32[10,64], index: 1, kind: input, shape index: {}]   ;;  %s1126_s0 = inlined_call_operand.vmem [shape: f32[8,8,10], index: 0, kind: input, shape index: {}]   ;;  %s1127_s3 = inlined_call_operand.vmem [shape: f32[64,64], index: 3, kind: input, shape index: {}]   ;;  %s1128_s2 = inlined_call_operand.vmem [shape: f32[1,64], index: 2, kind: input, shape index: {}]   ;;  %s1129_s5 = inlined_call_operand.vmem [shape: f32[64,64], index: 5, kind: input, shape index: {}]   ;;  %s1130_s7 = inlined_call_operand.vmem [shape: f32[64,256], index: 7, kind: input, shape index: {}]   ;;  %s1131_s4 = inlined_call_operand.vmem [shape: f32[1,64], index: 4, kind: input, shape index: {}]   ;;  %s1132_s6 = inlined_call_operand.vmem [shape: f32[1,64], index: 6, kind: input, shape index: {}]   ;;  %s1133_s8 = inlined_call_operand.vmem [shape: f32[1,256], index: 8, kind: input, shape index: {}]   ;;  %s1134_s9 = inlined_call_operand.vmem [shape: f32[8,8,256], index: 9, kind: output, shape index: {}]  }
   0x1   :  { %v41_v0 = vld [vmem:[%s1125_s1 + $0x8] sm:$0x3]  ;;  %v40_v1 = vld [vmem:[%s1125_s1] sm:$0xff]  ;;  %v34_v4 = vld [vmem:[%s1126_s0 + $0x10] sm:$0xff] }
   0x2   :  { %v32_v2 = vld [vmem:[%s1126_s0] sm:$0xff]  ;;  %751 = vmatprep.subr.msk.mxu0 %vm74_vm0, %v41_v0  ;;  %v33_v3 = vld [vmem:[%s1126_s0 + $0x8] sm:$0xff]  ;;  %v35_v5 = vld [vmem:[%s1126_s0 + $0x18] sm:$0xff] }
   0x3   :  { %755 = vmatprep.mubr.msk.f32.mxu0 %vm49_vm1, %v32_v2  ;;  %752 = vmatpush3.msk.msra.mxu0 %vm74_vm0, %v41_v0  ;;  %v36_v6 = vld [vmem:[%s1126_s0 + $0x20] sm:$0xff]  ;;  %v37_v7 = vld [vmem:[%s1126_s0 + $0x28] sm:$0xff]  ;;  %v38_v8 = vld [vmem:[%s1126_s0 + $0x30] sm:$0xff] }
   0x4   :  { %753 = vmatprep.subr.mxu0 %v40_v1  ;;  %v39_v9 = vld [vmem:[%s1126_s0 + $0x38] sm:$0xff]  ;;  %v197_v11 = vld [vmem:[%s1127_s3 + $0x30] sm:$0xff]  ;;  %v196_v12 = vld [vmem:[%s1127_s3 + $0x28] sm:$0xff] }
   0x5   :  { %754 = vmatpush3.msra.mxu0 %v40_v1  ;;  %v198_v10 = vld [vmem:[%s1127_s3 + $0x38] sm:$0xff]  ;;  %v195_v13 = vld [vmem:[%s1127_s3 + $0x20] sm:$0xff]  ;;  %v193_v15 = vld [vmem:[%s1127_s3 + $0x10] sm:$0xff] }
   0x6   :  { %756 = vmatmul.mubr.msk.f32.vlgmr.msra.gmra.mxu0 %vm49_vm1, %v33_v3  ;;  %767 = vmatprep.subr.mxu0 %v198_v10  ;;  %v194_v14 = vld [vmem:[%s1127_s3 + $0x18] sm:$0xff]  ;;  %v192_v16 = vld [vmem:[%s1127_s3 + $0x8] sm:$0xff]  ;;  %v191_v17 = vld [vmem:[%s1127_s3] sm:$0xff] }
   0x7   :  { %758 = vmatprep.mubr.msk.f32.mxu0 %vm49_vm1, %v34_v4  ;;  %768 = vmatpush3.msra.mxu0 %v198_v10  ;;  %v673_v18 = vld [vmem:[%s1128_s2] ss:$0 sm:$0xff]  ;;  %v351_v43 = vld [vmem:[%s1129_s5 + $0x38] sm:$0xff]  ;;  %v350_v44 = vld [vmem:[%s1129_s5 + $0x30] sm:$0xff] }
   0x8   :  { %769 = vmatprep.subr.mxu0 %v197_v11  ;;  %v349_v45 = vld [vmem:[%s1129_s5 + $0x28] sm:$0xff]  ;;  %v348_v46 = vld [vmem:[%s1129_s5 + $0x20] sm:$0xff]  ;;  %v347_v47 = vld [vmem:[%s1129_s5 + $0x18] sm:$0xff] }
   0x9   :  { %770 = vmatpush3.msra.mxu0 %v197_v11  ;;  %v346_v48 = vld [vmem:[%s1129_s5 + $0x10] sm:$0xff]  ;;  %v345_v49 = vld [vmem:[%s1129_s5 + $0x8] sm:$0xff]  ;;  %v344_v50 = vld [vmem:[%s1129_s5] sm:$0xff] }
   0xa   :  { %759 = vmatmul.mubr.msk.f32.gmra.mxu0 %vm49_vm1, %v35_v5  ;;  %771 = vmatprep.subr.mxu0 %v196_v12  ;;  %v503_v51 = vld [vmem:[%s1130_s7 + $0x78] sm:$0xff]  ;;  %v502_v52 = vld [vmem:[%s1130_s7 + $0x70] sm:$0xff]  ;;  %v501_v53 = vld [vmem:[%s1130_s7 + $0x68] sm:$0xff] }
   0xb   :  { %761 = vmatprep.mubr.msk.f32.mxu0 %vm49_vm1, %v36_v6  ;;  %772 = vmatpush3.msra.mxu0 %v196_v12  ;;  %v500_v54 = vld [vmem:[%s1130_s7 + $0x60] sm:$0xff]  ;;  %v499_v55 = vld [vmem:[%s1130_s7 + $0x58] sm:$0xff]  ;;  %v498_v56 = vld [vmem:[%s1130_s7 + $0x50] sm:$0xff] }
   0xc   :  { %773 = vmatprep.subr.mxu0 %v195_v13  ;;  %556 = vmatprep.subr.mxu1 %v503_v51  ;;  %v497_v57 = vld [vmem:[%s1130_s7 + $0x48] sm:$0xff]  ;;  %v496_v58 = vld [vmem:[%s1130_s7 + $0x40] sm:$0xff]  ;;  %v495_v59 = vld [vmem:[%s1130_s7 + $0x38] sm:$0xff] }
   0xd   :  { %774 = vmatpush3.msra.mxu0 %v195_v13  ;;  %557 = vmatpush1.msra.mxu1 %v502_v52  ;;  %v494_v60 = vld [vmem:[%s1130_s7 + $0x30] sm:$0xff]  ;;  %v493_v61 = vld [vmem:[%s1130_s7 + $0x28] sm:$0xff]  ;;  %v683_v62 = vld [vmem:[%s1131_s4] ss:$0 sm:$0xff] }
   0xe   :  { %762 = vmatmul.mubr.msk.f32.gmra.mxu0 %vm49_vm1, %v37_v7  ;;  %775 = vmatprep.subr.mxu0 %v194_v14 }
   0xf   :  { %764 = vmatprep.mubr.msk.f32.mxu0 %vm49_vm1, %v38_v8  ;;  %776 = vmatpush3.msra.mxu0 %v194_v14 }
  0x10   :  { %777 = vmatprep.subr.mxu0 %v193_v15  ;;  %558 = vmatprep.subr.mxu1 %v501_v53 }
  0x11   :  { %778 = vmatpush3.msra.mxu0 %v193_v15  ;;  %559 = vmatpush1.msra.mxu1 %v500_v54 }
  0x12   :  { %765 = vmatmul.mubr.msk.f32.gmra.mxu0 %vm49_vm1, %v39_v9  ;;  %779 = vmatprep.subr.mxu0 %v192_v16 }
  0x13   :  { %780 = vmatpush3.msra.mxu0 %v192_v16  ;;  %560 = vmatprep.subr.mxu1 %v499_v55 }
  0x14   :  { %781 = vmatprep.subr.mxu0 %v191_v17  ;;  %561 = vmatpush1.msra.mxu1 %v498_v56 }
  0x15   :  { %782 = vmatpush3.msra.mxu0 %v191_v17  ;;  %562 = vmatprep.subr.mxu1 %v497_v57 }
  0x16   :  { %795 = vmatprep.subr.mxu0 %v351_v43  ;;  %563 = vmatpush1.msra.mxu1 %v496_v58 }
  0x17   :  { %564 = vmatprep.subr.mxu1 %v495_v59 }
  0x18   :  { %565 = vmatpush1.msra.mxu1 %v494_v60 }
  0x19   :  { %566 = vmatprep.subr.mxu1 %v493_v61 }
  0xc6   :  { %v757_v19 = vpop.f32.mrf.mxu0 }
  0xc7   :  { %v150_v20 = vadd.f32 %v757_v19, %v673_v18 }
  0xc8   :  { %v144_v21 = vpop.f32.mrf.mxu0 }
  0xc9   :  { %v145_v22 = vadd.f32 %v673_v18, %v144_v21 }
  0xca   :  { %v760_v23 = vpop.f32.mrf.mxu0 }
  0xcb   :  { %824 = vtanh.f32 %v145_v22  ;;  %v160_v24 = vadd.f32 %v760_v23, %v673_v18  ;;  %v492_v23 = vld [vmem:[%s1130_s7 + $0x20] sm:$0xff] }
  0xcc   :  { %826 = vtanh.f32 %v150_v20  ;;  %v154_v25 = vpop.f32.mrf.mxu0  ;;  %567 = vmatpush1.msra.mxu1 %v492_v23 }
  0xcd   :  { %v155_v26 = vadd.f32 %v673_v18, %v154_v25  ;;  %828 = vtanh.f32 %v160_v24  ;;  %v491_v24 = vld [vmem:[%s1130_s7 + $0x18] sm:$0xff]  ;;  %v490_v25 = vld [vmem:[%s1130_s7 + $0x10] sm:$0xff] }
  0xce   :  { %v763_v27 = vpop.f32.mrf.mxu0  ;;  %568 = vmatprep.subr.mxu1 %v491_v24 }
  0xcf   :  { %830 = vtanh.f32 %v155_v26  ;;  %v170_v28 = vadd.f32 %v763_v27, %v673_v18  ;;  %569 = vmatpush1.msra.mxu1 %v490_v25  ;;  %v489_v26 = vld [vmem:[%s1130_s7 + $0x8] sm:$0xff]  ;;  %v488_v27 = vld [vmem:[%s1130_s7] sm:$0xff] }
  0xd0   :  { %v164_v29 = vpop.f32.mrf.mxu0  ;;  %570 = vmatprep.subr.mxu1 %v489_v26 }
  0xd1   :  { %v165_v30 = vadd.f32 %v673_v18, %v164_v29  ;;  %832 = vtanh.f32 %v170_v28  ;;  %571 = vmatpush1.msra.mxu1 %v488_v27  ;;  %v856_v28 = vmov 0.0  }
  0xd2   :  { %v766_v31 = vpop.f32.mrf.mxu0  ;;  %604 = vmatprep.mubr.f32.mxu1 %v856_v28 }
  0xd3   :  { %834 = vtanh.f32 %v165_v30  ;;  %v180_v32 = vadd.f32 %v766_v31, %v673_v18  ;;  %v692_v30 = vld [vmem:[%s1132_s6] ss:$0 sm:$0xff] }
  0xd4   :  { %v174_v33 = vpop.f32.mrf.mxu0 }
  0xd5   :  { %v175_v34 = vadd.f32 %v673_v18, %v174_v33  ;;  %836 = vtanh.f32 %v180_v32 }
  0xd7   :  { %838 = vtanh.f32 %v175_v34 }
  0xd8   :  { %v825_v35 = vpop.eup %824 }
  0xd9   :  { %v827_v36 = vpop.eup %826  ;;  %783 = vmatprep.mubr.msk.f32.mxu0 %vm206_vm2, %v825_v35 }
  0xda   :  { %784 = vmatmul.mubr.msk.f32.vlgmr.msra.gmra.mxu0 %vm206_vm2, %v827_v36  ;;  %v829_v37 = vpop.eup %828 }
  0xdb   :  { %796 = vmatpush3.msra.mxu0 %v351_v43 }
  0xdc   :  { %v831_v38 = vpop.eup %830  ;;  %797 = vmatprep.subr.mxu0 %v350_v44 }
  0xdd   :  { %786 = vmatprep.mubr.msk.f32.mxu0 %vm206_vm2, %v831_v38  ;;  %798 = vmatpush3.msra.mxu0 %v350_v44 }
  0xde   :  { %787 = vmatmul.mubr.msk.f32.gmra.mxu0 %vm206_vm2, %v829_v37  ;;  %v833_v39 = vpop.eup %832  ;;  %799 = vmatprep.subr.mxu0 %v349_v45 }
  0xdf   :  { %800 = vmatpush3.msra.mxu0 %v349_v45 }
  0xe0   :  { %v835_v40 = vpop.eup %834  ;;  %801 = vmatprep.subr.mxu0 %v348_v46 }
  0xe1   :  { %789 = vmatprep.mubr.msk.f32.mxu0 %vm206_vm2, %v835_v40  ;;  %802 = vmatpush3.msra.mxu0 %v348_v46  ;;  %v506_v46 = vlaneseq }
  0xe2   :  { %790 = vmatmul.mubr.msk.f32.gmra.mxu0 %vm206_vm2, %v833_v39  ;;  %v837_v41 = vpop.eup %836  ;;  %803 = vmatprep.subr.mxu0 %v347_v47 }
  0xe3   :  { %804 = vmatpush3.msra.mxu0 %v347_v47  ;;  %v507_v47 = vshrl.u32 %v506_v46, 7 }
  0xe4   :  { %v839_v42 = vpop.eup %838  ;;  %805 = vmatprep.subr.mxu0 %v346_v48 }
  0xe5   :  { %792 = vmatprep.mubr.msk.f32.mxu0 %vm206_vm2, %v839_v42  ;;  %806 = vmatpush3.msra.mxu0 %v346_v48  ;;  %v508_v48 = vsub.s32 0, %v507_v47 }
  0xe6   :  { %793 = vmatmul.mubr.msk.f32.gmra.mxu0 %vm206_vm2, %v837_v41  ;;  %807 = vmatprep.subr.mxu0 %v345_v49 }
  0xe7   :  { %808 = vmatpush3.msra.mxu0 %v345_v49  ;;  %v504_v49 = vld [vmem:[%s1133_s8] sm:$0x3] }
  0xe8   :  { %809 = vmatprep.subr.mxu0 %v344_v50  ;;  %v509_v51 = vrot.slane %v504_v49, %v508_v48 }
  0xe9   :  { %810 = vmatpush3.msra.mxu0 %v344_v50  ;;  %v512_v50 = vsub.s32 1, %v507_v47 }
  0xeb   :  { %v513_v52 = vrot.slane %v504_v49, %v512_v50 }
 0x19a   :  { %v785_v63 = vpop.f32.mrf.mxu0 }
 0x19b   :  { %v303_v0 = vadd.f32 %v785_v63, %v683_v62 }
 0x19c   :  { %v297_v1 = vpop.f32.mrf.mxu0 }
 0x19d   :  { %v298_v2 = vadd.f32 %v683_v62, %v297_v1 }
 0x19e   :  { %v788_v3 = vpop.f32.mrf.mxu0 }
 0x19f   :  { %840 = vtanh.f32 %v298_v2  ;;  %v313_v4 = vadd.f32 %v788_v3, %v683_v62 }
 0x1a0   :  { %842 = vtanh.f32 %v303_v0  ;;  %v307_v5 = vpop.f32.mrf.mxu0 }
 0x1a1   :  { %v308_v6 = vadd.f32 %v683_v62, %v307_v5 }
 0x1a2   :  { %v791_v7 = vpop.f32.mrf.mxu0 }
 0x1a3   :  { %844 = vtanh.f32 %v308_v6  ;;  %v323_v8 = vadd.f32 %v791_v7, %v683_v62 }
 0x1a4   :  { %846 = vtanh.f32 %v313_v4  ;;  %v317_v9 = vpop.f32.mrf.mxu0 }
 0x1a5   :  { %v318_v10 = vadd.f32 %v683_v62, %v317_v9  ;;  %848 = vtanh.f32 %v323_v8 }
 0x1a6   :  { %v794_v11 = vpop.f32.mrf.mxu0 }
 0x1a7   :  { %850 = vtanh.f32 %v318_v10  ;;  %v333_v12 = vadd.f32 %v794_v11, %v683_v62 }
 0x1a8   :  { %v327_v13 = vpop.f32.mrf.mxu0 }
 0x1a9   :  { %v328_v14 = vadd.f32 %v683_v62, %v327_v13  ;;  %852 = vtanh.f32 %v333_v12 }
 0x1ab   :  { %854 = vtanh.f32 %v328_v14 }
 0x1ac   :  { %v841_v15 = vpop.eup %840 }
 0x1ad   :  { %v843_v16 = vpop.eup %842  ;;  %811 = vmatprep.mubr.msk.f32.mxu0 %vm206_vm2, %v841_v15 }
 0x1ae   :  { %812 = vmatmul.mubr.msk.f32.vlgmr.msra.gmra.mxu0 %vm206_vm2, %v843_v16 }
 0x1b0   :  { %v845_v17 = vpop.eup %844 }
 0x1b1   :  { %v847_v18 = vpop.eup %846  ;;  %814 = vmatprep.mubr.msk.f32.mxu0 %vm206_vm2, %v845_v17 }
 0x1b2   :  { %815 = vmatmul.mubr.msk.f32.gmra.mxu0 %vm206_vm2, %v847_v18  ;;  %v849_v19 = vpop.eup %848 }
 0x1b4   :  { %v851_v20 = vpop.eup %850 }
 0x1b5   :  { %817 = vmatprep.mubr.msk.f32.mxu0 %vm206_vm2, %v851_v20 }
 0x1b6   :  { %818 = vmatmul.mubr.msk.f32.gmra.mxu0 %vm206_vm2, %v849_v19  ;;  %v853_v21 = vpop.eup %852 }
 0x1b8   :  { %v855_v22 = vpop.eup %854 }
 0x1b9   :  { %820 = vmatprep.mubr.msk.f32.mxu0 %vm206_vm2, %v855_v22 }
 0x1ba   :  { %821 = vmatmul.mubr.msk.f32.gmra.mxu0 %vm206_vm2, %v853_v21 }
 0x26e   :  { %v813_v29 = vpop.f32.mrf.mxu0 }
 0x26f   :  { %v455_v34 = vadd.f32 %v813_v29, %v692_v30 }
 0x270   :  { %v449_v31 = vpop.f32.mrf.mxu0 }
 0x271   :  { %v450_v32 = vadd.f32 %v692_v30, %v449_v31 }
 0x272   :  { %v816_v33 = vpop.f32.mrf.mxu0 }
 0x273   :  { %701 = vmatmul.mubr.msk.f32.vlgmr.msra.gmra.mxu1 %vm206_vm2, %v450_v32  ;;  %v465_v38 = vadd.f32 %v816_v33, %v692_v30 }
 0x274   :  { %610 = vmatprep.mubr.f32.mxu1 %v856_v28  ;;  %v459_v35 = vpop.f32.mrf.mxu0 }
 0x275   :  { %v460_v36 = vadd.f32 %v692_v30, %v459_v35 }
 0x276   :  { %v819_v37 = vpop.f32.mrf.mxu0 }
 0x277   :  { %702 = vmatmul.mubr.msk.f32.gmra.mxu1 %vm206_vm2, %v455_v34  ;;  %v475_v42 = vadd.f32 %v819_v37, %v692_v30 }
 0x278   :  { %616 = vmatprep.mubr.f32.mxu1 %v856_v28  ;;  %v469_v39 = vpop.f32.mrf.mxu0 }
 0x279   :  { %v470_v40 = vadd.f32 %v692_v30, %v469_v39 }
 0x27a   :  { %v822_v41 = vpop.f32.mrf.mxu0 }
 0x27b   :  { %703 = vmatmul.mubr.msk.f32.gmra.mxu1 %vm206_vm2, %v460_v36  ;;  %v485_v45 = vadd.f32 %v822_v41, %v692_v30 }
 0x27c   :  { %622 = vmatprep.mubr.f32.mxu1 %v856_v28  ;;  %v479_v43 = vpop.f32.mrf.mxu0 }
 0x27d   :  { %v480_v44 = vadd.f32 %v692_v30, %v479_v43 }
 0x27f   :  { %704 = vmatmul.mubr.msk.f32.gmra.mxu1 %vm206_vm2, %v465_v38 }
 0x280   :  { %628 = vmatprep.mubr.f32.mxu1 %v856_v28 }
 0x283   :  { %705 = vmatmul.mubr.msk.f32.gmra.mxu1 %vm206_vm2, %v470_v40 }
 0x284   :  { %634 = vmatprep.mubr.f32.mxu1 %v856_v28 }
 0x287   :  { %706 = vmatmul.mubr.msk.f32.gmra.mxu1 %vm206_vm2, %v475_v42 }
 0x288   :  { %640 = vmatprep.mubr.f32.mxu1 %v856_v28 }
 0x28b   :  { %707 = vmatmul.mubr.msk.f32.gmra.mxu1 %vm206_vm2, %v480_v44 }
 0x28c   :  { %646 = vmatprep.mubr.f32.mxu1 %v856_v28 }
 0x28f   :  { %708 = vmatmul.mubr.msk.f32.gmra.mxu1 %vm206_vm2, %v485_v45 }
 0x333   :  { %v606_v53 = vpop.f32.mrf.mxu1 }
 0x334   :  { %v607_v54 = vadd.f32 %v606_v53, %v509_v51 }
 0x335   :  { %v608_v55 = vpop.f32.mrf.mxu1 }
 0x336   :  { %653 = vst [vmem:[%s1134_s9] sm:$0xff] %v607_v54  ;;  %v609_v56 = vadd.f32 %v608_v55, %v513_v52 }
 0x337   :  { %v612_v57 = vpop.f32.mrf.mxu1 }
 0x338   :  { %654 = vst [vmem:[%s1134_s9 + $0x8] sm:$0xff] %v609_v56  ;;  %v613_v58 = vadd.f32 %v612_v57, %v509_v51 }
 0x339   :  { %v614_v59 = vpop.f32.mrf.mxu1 }
 0x33a   :  { %655 = vst [vmem:[%s1134_s9 + $0x10] sm:$0xff] %v613_v58  ;;  %v615_v60 = vadd.f32 %v614_v59, %v513_v52 }
 0x33b   :  { %v618_v61 = vpop.f32.mrf.mxu1 }
 0x33c   :  { %656 = vst [vmem:[%s1134_s9 + $0x18] sm:$0xff] %v615_v60  ;;  %v619_v62 = vadd.f32 %v618_v61, %v509_v51 }
 0x33d   :  { %v620_v63 = vpop.f32.mrf.mxu1 }
 0x33e   :  { %657 = vst [vmem:[%s1134_s9 + $0x20] sm:$0xff] %v619_v62  ;;  %v621_v0 = vadd.f32 %v620_v63, %v513_v52 }
 0x33f   :  { %v624_v1 = vpop.f32.mrf.mxu1 }
 0x340   :  { %658 = vst [vmem:[%s1134_s9 + $0x28] sm:$0xff] %v621_v0  ;;  %v625_v2 = vadd.f32 %v624_v1, %v509_v51 }
 0x341   :  { %v626_v3 = vpop.f32.mrf.mxu1 }
 0x342   :  { %659 = vst [vmem:[%s1134_s9 + $0x30] sm:$0xff] %v625_v2  ;;  %v627_v4 = vadd.f32 %v626_v3, %v513_v52 }
 0x343   :  { %v630_v5 = vpop.f32.mrf.mxu1 }
 0x344   :  { %660 = vst [vmem:[%s1134_s9 + $0x38] sm:$0xff] %v627_v4  ;;  %v631_v6 = vadd.f32 %v630_v5, %v509_v51 }
 0x345   :  { %v632_v7 = vpop.f32.mrf.mxu1 }
 0x346   :  { %661 = vst [vmem:[%s1134_s9 + $0x40] sm:$0xff] %v631_v6  ;;  %v633_v8 = vadd.f32 %v632_v7, %v513_v52 }
 0x347   :  { %v636_v9 = vpop.f32.mrf.mxu1 }
 0x348   :  { %662 = vst [vmem:[%s1134_s9 + $0x48] sm:$0xff] %v633_v8  ;;  %v637_v10 = vadd.f32 %v636_v9, %v509_v51 }
 0x349   :  { %v638_v11 = vpop.f32.mrf.mxu1 }
 0x34a   :  { %663 = vst [vmem:[%s1134_s9 + $0x50] sm:$0xff] %v637_v10  ;;  %v639_v12 = vadd.f32 %v638_v11, %v513_v52 }
 0x34b   :  { %v642_v13 = vpop.f32.mrf.mxu1 }
 0x34c   :  { %664 = vst [vmem:[%s1134_s9 + $0x58] sm:$0xff] %v639_v12  ;;  %v643_v14 = vadd.f32 %v642_v13, %v509_v51 }
 0x34d   :  { %v644_v15 = vpop.f32.mrf.mxu1 }
 0x34e   :  { %665 = vst [vmem:[%s1134_s9 + $0x60] sm:$0xff] %v643_v14  ;;  %v645_v16 = vadd.f32 %v644_v15, %v513_v52 }
 0x34f   :  { %v648_v17 = vpop.f32.mrf.mxu1 }
 0x350   :  { %666 = vst [vmem:[%s1134_s9 + $0x68] sm:$0xff] %v645_v16  ;;  %v649_v18 = vadd.f32 %v648_v17, %v509_v51 }
 0x351   :  { %v650_v19 = vpop.f32.mrf.mxu1 }
 0x352   :  { %667 = vst [vmem:[%s1134_s9 + $0x70] sm:$0xff] %v649_v18  ;;  %v651_v20 = vadd.f32 %v650_v19, %v513_v52 }
 0x354   :  { %668 = vst [vmem:[%s1134_s9 + $0x78] sm:$0xff] %v651_v20 }

</bundles_post_ra>
